<compile_context>
chip_gen: v7x
topology: tpu7x:2x2x1
jax: 0.10.0
libtpu: 0.0.40
codegen_flags: <defaults>
</compile_context>

<pallas_src>
import functools

import jax
import jax.numpy as jnp
from jax.experimental import pallas as pl
from jax.experimental.pallas import tpu as pltpu

# -----------------------------------------------------------------------------
# Model configuration (matches CriticNet.__init__ shapes)
# -----------------------------------------------------------------------------
STATE_DIM = 6
ACTION_DIM = 2
IN_DIM = STATE_DIM + ACTION_DIM                       # lin1 input = 8
LAYER_DIMS = [IN_DIM, 32, 64, 128, 64, 32, 16, 1]     # lin1 .. lin7
NUM_LAYERS = len(LAYER_DIMS) - 1                      # 7

PAD = 128                 # every feature dim zero-padded to one full lane/sublane width
MAX_BATCH_TILE = 1024     # upper bound on batch rows per grid step


# -----------------------------------------------------------------------------
# Pallas kernel: whole MLP for one batch tile (activations kept transposed:
# features on sublanes, batch on lanes)
# -----------------------------------------------------------------------------
def critic_mlp_kernel(x_ref, w_ref, b_ref, o_ref):
    # x_ref: (IN_DIM, tile) f32      input features (sublanes) x batch (lanes)
    # w_ref: (7, 128, 128) bf16      stacked W^T (out_features, in_features), zero-padded
    # b_ref: (7, 128, 1)   f32       stacked biases, zero-padded
    # o_ref: (1, tile)     f32       Q row, lane-dense over batch
    tile = x_ref.shape[1]

    # Lane-pad the 8 input features up to 128 rows once, in-kernel (exact:
    # padded weight columns are zero), then feed the MXU in bf16.
    h = jnp.concatenate(
        [x_ref[...], jnp.zeros((PAD - IN_DIM, tile), jnp.float32)], axis=0
    ).astype(jnp.bfloat16)

    # Static unroll over the 7 layers: each is a (128,128)x(128,tile) bf16 MXU
    # matmul with f32 accumulation, then bias + ReLU in f32.
    y = None
    for l in range(NUM_LAYERS):
        y = jnp.dot(w_ref[l], h, preferred_element_type=jnp.float32)
        y = jnp.maximum(y + b_ref[l], 0.0)          # (128,1) bias broadcasts over lanes
        h = y.astype(jnp.bfloat16) if l + 1 < NUM_LAYERS else y

    # lin7 has out_features == 1, so only row 0 is real (rows 1..127 are
    # relu(0 + 0) == 0).  Store it as a lane-dense (1, tile) row.
    o_ref[...] = y[0:1, :]


# -----------------------------------------------------------------------------
# Wrapper
# -----------------------------------------------------------------------------
def _pick_batch_tile(batch, max_tile=MAX_BATCH_TILE):
    """Rows per grid step: as large as possible (amortizes ~0.35us/step grid
    overhead) but keeping >= 2 grid steps when the batch allows it so the
    'parallel' axis can shard across v7x's 2 TensorCores.  Multiple of 128 so
    the output stays lane-dense."""
    if batch <= 128:
        return 128
    half = -(-batch // 2)            # cdiv(batch, 2)
    tile = -(-half // 128) * 128     # round up to a multiple of 128
    return min(max_tile, tile)


@functools.partial(jax.jit, static_argnames=("max_batch_tile",))
def critic_forward(x, w_stacked, b_stacked, *, max_batch_tile=MAX_BATCH_TILE):
    """x: (B, IN_DIM); w_stacked: (7,128,128) bf16 [W^T]; b_stacked: (7,128,1) f32."""
    B, D = x.shape
    assert D == IN_DIM

    batch_tile = _pick_batch_tile(B, max_batch_tile)
    num_tiles = pl.cdiv(B, batch_tile)
    b_pad = num_tiles * batch_tile

    # Batch-pad + transpose only: (B, 8) -> (8, b_pad).  No 128-lane padding in
    # HBM; this is a tiny (8 * b_pad * 4 bytes) XLA op.
    x_t = jnp.zeros((IN_DIM, b_pad), jnp.float32).at[:, :B].set(
        x.astype(jnp.float32).T)

    flops = 2 * b_pad * NUM_LAYERS * PAD * PAD
    bytes_accessed = (x_t.size * 4 + w_stacked.size * 2
                      + b_stacked.size * 4 + b_pad * 4)

    out = pl.pallas_call(
        critic_mlp_kernel,
        out_shape=jax.ShapeDtypeStruct((num_tiles, 1, batch_tile), jnp.float32),
        grid_spec=pl.GridSpec(
            grid=(num_tiles,),
            in_specs=[
                # batch-tiled input: (8, batch_tile) blocks, lane-dense over batch
                pl.BlockSpec((IN_DIM, batch_tile), lambda i: (0, i)),
                # full weight / bias slabs, resident across all grid steps
                pl.BlockSpec((NUM_LAYERS, PAD, PAD), lambda i: (0, 0, 0)),
                pl.BlockSpec((NUM_LAYERS, PAD, 1), lambda i: (0, 0, 0)),
            ],
            # lane-dense (1, batch_tile) Q row per grid step
            out_specs=pl.BlockSpec((None, 1, batch_tile), lambda i: (i, 0, 0)),
        ),
        compiler_params=pltpu.CompilerParams(
            dimension_semantics=("parallel",),   # shards batch tiles across v7x TCs
        ),
        cost_estimate=pl.CostEstimate(
            flops=flops, transcendentals=0, bytes_accessed=bytes_accessed),
    )(x_t, w_stacked, b_stacked)

    # (num_tiles, 1, batch_tile) -> (b_pad, 1) -> drop the batch padding.
    return out.reshape(b_pad, 1)[:B]


# -----------------------------------------------------------------------------
# Parameter init (PyTorch nn.Linear default: U(-k, k), k = 1/sqrt(fan_in))
# -----------------------------------------------------------------------------
def init_params(key):
    params = []
    for li in range(NUM_LAYERS):
        fan_in, fan_out = LAYER_DIMS[li], LAYER_DIMS[li + 1]
        key, kw, kb = jax.random.split(key, 3)
        bound = 1.0 / (fan_in ** 0.5)
        w = jax.random.uniform(kw, (fan_in, fan_out), jnp.float32, -bound, bound)
        b = jax.random.uniform(kb, (fan_out,), jnp.float32, -bound, bound)
        params.append((w, b))
    return params


def stack_params(params):
    """Zero-pad each layer to 128 features, stack W^T (out,in) into one bf16
    slab and biases into one (7,128,1) f32 slab."""
    w_stacked = jnp.zeros((NUM_LAYERS, PAD, PAD), jnp.float32)
    b_stacked = jnp.zeros((NUM_LAYERS, PAD, 1), jnp.float32)
    for l, (w, b) in enumerate(params):
        fin, fout = w.shape
        w_stacked = w_stacked.at[l, :fout, :fin].set(w.T)
        b_stacked = b_stacked.at[l, :fout, 0].set(b)
    return w_stacked.astype(jnp.bfloat16), b_stacked


# -----------------------------------------------------------------------------
# Pure-JAX reference mirroring kernel numerics (bf16 operands, f32 accumulate,
# f32 bias/ReLU) so the check is tight despite the bf16 weight slab.
# -----------------------------------------------------------------------------
def reference_forward(x, params):
    h = x.astype(jnp.float32)
    for (w, b) in params:
        y = jnp.dot(h.astype(jnp.bfloat16), w.astype(jnp.bfloat16),
                    preferred_element_type=jnp.float32) + b
        h = jnp.maximum(y, 0.0)          # ReLU on every layer, incl. lin7 (matches forward())
    return h


if __name__ == "__main__":
    key = jax.random.PRNGKey(0)
    key, kx = jax.random.split(key)

    # Small demo batch; deliberately not a tile multiple (exercises batch
    # padding) and large enough that the grid has 2 parallel steps.
    B = 300
    x = jax.random.normal(kx, (B, IN_DIM), jnp.float32)

    params = init_params(key)
    w_stacked, b_stacked = stack_params(params)

    out = critic_forward(x, w_stacked, b_stacked)
    out = jax.block_until_ready(out)

    ref = reference_forward(x, params)
    assert out.shape == (B, 1), out.shape
    assert jnp.allclose(out, ref, atol=2e-3, rtol=2e-3), (
        f"max abs diff {jnp.max(jnp.abs(out - ref))}")

    print("KERNEL_OK")
</pallas_src>

<mosaic_0001>
module attributes {stable_mosaic.version = 11 : i64} {
  func.func @critic_mlp_kernel(%arg0: i32, %arg1: memref<8x256xf32, #tpu.memory_space<vmem>>, %arg2: memref<7x128x128xbf16, #tpu.memory_space<vmem>>, %arg3: memref<7x128x1xf32, #tpu.memory_space<vmem>>, %arg4: memref<1x1x256xf32, #tpu.memory_space<vmem>>) attributes {dimension_semantics = [#tpu.dimension_semantics<parallel>], iteration_bounds = array<i64: 2>, scalar_prefetch = 0 : i64, scratch_operands = 0 : i64, tpu.core_type = #tpu.core_type<tc>, window_params = [{transform_indices = @transform_0, window_bounds = array<i64: 8, 256>}, {pipeline_mode = #tpu.pipeline_mode<synchronous>, transform_indices = @transform_1, window_bounds = array<i64: 7, 128, 128>}, {pipeline_mode = #tpu.pipeline_mode<synchronous>, transform_indices = @transform_2, window_bounds = array<i64: 7, 128, 1>}, {transform_indices = @transform_3, window_bounds = array<i64: 1, 1, 256>}]} {
    %c0 = arith.constant 0 : index
    %c0_0 = arith.constant 0 : index
    %0 = vector.load %arg1[%c0, %c0_0] : memref<8x256xf32, #tpu.memory_space<vmem>>, vector<8x256xf32>
    %cst = arith.constant 0.000000e+00 : f32
    %1 = vector.broadcast %cst : f32 to vector<120x256xf32>
    %2 = tpu.concatenate %0, %1 in 0 : vector<8x256xf32>, vector<120x256xf32> -> vector<128x256xf32>
    %3 = arith.truncf %2 : vector<128x256xf32> to vector<128x256xbf16>
    %c0_1 = arith.constant 0 : index
    %c0_2 = arith.constant 0 : index
    %c0_3 = arith.constant 0 : index
    %4 = vector.load %arg2[%c0_1, %c0_2, %c0_3] : memref<7x128x128xbf16, #tpu.memory_space<vmem>>, vector<1x128x128xbf16>
    %5 = vector.shape_cast %4 : vector<1x128x128xbf16> to vector<128x128xbf16>
    %cst_4 = arith.constant dense<0.000000e+00> : vector<128x256xf32>
    %6 = tpu.matmul %5, %3, %cst_4 {dimension_numbers = #tpu.dot_dimension_numbers<[1], [0], [0], [1], [0, 0, 1, 1], [], []>} : vector<128x128xbf16>, vector<128x256xbf16>, vector<128x256xf32> -> vector<128x256xf32>
    %c0_5 = arith.constant 0 : index
    %c0_6 = arith.constant 0 : index
    %c0_7 = arith.constant 0 : index
    %7 = vector.load %arg3[%c0_5, %c0_6, %c0_7] : memref<7x128x1xf32, #tpu.memory_space<vmem>>, vector<1x128x1xf32>
    %8 = vector.shape_cast %7 : vector<1x128x1xf32> to vector<128x1xf32>
    %9 = vector.broadcast %8 : vector<128x1xf32> to vector<128x256xf32>
    %10 = arith.addf %6, %9 : vector<128x256xf32>
    %cst_8 = arith.constant 0.000000e+00 : f32
    %11 = vector.broadcast %cst_8 : f32 to vector<128x256xf32>
    %12 = arith.maximumf %10, %11 : vector<128x256xf32>
    %13 = arith.truncf %12 : vector<128x256xf32> to vector<128x256xbf16>
    %c1 = arith.constant 1 : index
    %c0_9 = arith.constant 0 : index
    %c0_10 = arith.constant 0 : index
    %14 = vector.load %arg2[%c1, %c0_9, %c0_10] : memref<7x128x128xbf16, #tpu.memory_space<vmem>>, vector<1x128x128xbf16>
    %15 = vector.shape_cast %14 : vector<1x128x128xbf16> to vector<128x128xbf16>
    %cst_11 = arith.constant dense<0.000000e+00> : vector<128x256xf32>
    %16 = tpu.matmul %15, %13, %cst_11 {dimension_numbers = #tpu.dot_dimension_numbers<[1], [0], [0], [1], [0, 0, 1, 1], [], []>} : vector<128x128xbf16>, vector<128x256xbf16>, vector<128x256xf32> -> vector<128x256xf32>
    %c1_12 = arith.constant 1 : index
    %c0_13 = arith.constant 0 : index
    %c0_14 = arith.constant 0 : index
    %17 = vector.load %arg3[%c1_12, %c0_13, %c0_14] : memref<7x128x1xf32, #tpu.memory_space<vmem>>, vector<1x128x1xf32>
    %18 = vector.shape_cast %17 : vector<1x128x1xf32> to vector<128x1xf32>
    %19 = vector.broadcast %18 : vector<128x1xf32> to vector<128x256xf32>
    %20 = arith.addf %16, %19 : vector<128x256xf32>
    %cst_15 = arith.constant 0.000000e+00 : f32
    %21 = vector.broadcast %cst_15 : f32 to vector<128x256xf32>
    %22 = arith.maximumf %20, %21 : vector<128x256xf32>
    %23 = arith.truncf %22 : vector<128x256xf32> to vector<128x256xbf16>
    %c2 = arith.constant 2 : index
    %c0_16 = arith.constant 0 : index
    %c0_17 = arith.constant 0 : index
    %24 = vector.load %arg2[%c2, %c0_16, %c0_17] : memref<7x128x128xbf16, #tpu.memory_space<vmem>>, vector<1x128x128xbf16>
    %25 = vector.shape_cast %24 : vector<1x128x128xbf16> to vector<128x128xbf16>
    %cst_18 = arith.constant dense<0.000000e+00> : vector<128x256xf32>
    %26 = tpu.matmul %25, %23, %cst_18 {dimension_numbers = #tpu.dot_dimension_numbers<[1], [0], [0], [1], [0, 0, 1, 1], [], []>} : vector<128x128xbf16>, vector<128x256xbf16>, vector<128x256xf32> -> vector<128x256xf32>
    %c2_19 = arith.constant 2 : index
    %c0_20 = arith.constant 0 : index
    %c0_21 = arith.constant 0 : index
    %27 = vector.load %arg3[%c2_19, %c0_20, %c0_21] : memref<7x128x1xf32, #tpu.memory_space<vmem>>, vector<1x128x1xf32>
    %28 = vector.shape_cast %27 : vector<1x128x1xf32> to vector<128x1xf32>
    %29 = vector.broadcast %28 : vector<128x1xf32> to vector<128x256xf32>
    %30 = arith.addf %26, %29 : vector<128x256xf32>
    %cst_22 = arith.constant 0.000000e+00 : f32
    %31 = vector.broadcast %cst_22 : f32 to vector<128x256xf32>
    %32 = arith.maximumf %30, %31 : vector<128x256xf32>
    %33 = arith.truncf %32 : vector<128x256xf32> to vector<128x256xbf16>
    %c3 = arith.constant 3 : index
    %c0_23 = arith.constant 0 : index
    %c0_24 = arith.constant 0 : index
    %34 = vector.load %arg2[%c3, %c0_23, %c0_24] : memref<7x128x128xbf16, #tpu.memory_space<vmem>>, vector<1x128x128xbf16>
    %35 = vector.shape_cast %34 : vector<1x128x128xbf16> to vector<128x128xbf16>
    %cst_25 = arith.constant dense<0.000000e+00> : vector<128x256xf32>
    %36 = tpu.matmul %35, %33, %cst_25 {dimension_numbers = #tpu.dot_dimension_numbers<[1], [0], [0], [1], [0, 0, 1, 1], [], []>} : vector<128x128xbf16>, vector<128x256xbf16>, vector<128x256xf32> -> vector<128x256xf32>
    %c3_26 = arith.constant 3 : index
    %c0_27 = arith.constant 0 : index
    %c0_28 = arith.constant 0 : index
    %37 = vector.load %arg3[%c3_26, %c0_27, %c0_28] : memref<7x128x1xf32, #tpu.memory_space<vmem>>, vector<1x128x1xf32>
    %38 = vector.shape_cast %37 : vector<1x128x1xf32> to vector<128x1xf32>
    %39 = vector.broadcast %38 : vector<128x1xf32> to vector<128x256xf32>
    %40 = arith.addf %36, %39 : vector<128x256xf32>
    %cst_29 = arith.constant 0.000000e+00 : f32
    %41 = vector.broadcast %cst_29 : f32 to vector<128x256xf32>
    %42 = arith.maximumf %40, %41 : vector<128x256xf32>
    %43 = arith.truncf %42 : vector<128x256xf32> to vector<128x256xbf16>
    %c4 = arith.constant 4 : index
    %c0_30 = arith.constant 0 : index
    %c0_31 = arith.constant 0 : index
    %44 = vector.load %arg2[%c4, %c0_30, %c0_31] : memref<7x128x128xbf16, #tpu.memory_space<vmem>>, vector<1x128x128xbf16>
    %45 = vector.shape_cast %44 : vector<1x128x128xbf16> to vector<128x128xbf16>
    %cst_32 = arith.constant dense<0.000000e+00> : vector<128x256xf32>
    %46 = tpu.matmul %45, %43, %cst_32 {dimension_numbers = #tpu.dot_dimension_numbers<[1], [0], [0], [1], [0, 0, 1, 1], [], []>} : vector<128x128xbf16>, vector<128x256xbf16>, vector<128x256xf32> -> vector<128x256xf32>
    %c4_33 = arith.constant 4 : index
    %c0_34 = arith.constant 0 : index
    %c0_35 = arith.constant 0 : index
    %47 = vector.load %arg3[%c4_33, %c0_34, %c0_35] : memref<7x128x1xf32, #tpu.memory_space<vmem>>, vector<1x128x1xf32>
    %48 = vector.shape_cast %47 : vector<1x128x1xf32> to vector<128x1xf32>
    %49 = vector.broadcast %48 : vector<128x1xf32> to vector<128x256xf32>
    %50 = arith.addf %46, %49 : vector<128x256xf32>
    %cst_36 = arith.constant 0.000000e+00 : f32
    %51 = vector.broadcast %cst_36 : f32 to vector<128x256xf32>
    %52 = arith.maximumf %50, %51 : vector<128x256xf32>
    %53 = arith.truncf %52 : vector<128x256xf32> to vector<128x256xbf16>
    %c5 = arith.constant 5 : index
    %c0_37 = arith.constant 0 : index
    %c0_38 = arith.constant 0 : index
    %54 = vector.load %arg2[%c5, %c0_37, %c0_38] : memref<7x128x128xbf16, #tpu.memory_space<vmem>>, vector<1x128x128xbf16>
    %55 = vector.shape_cast %54 : vector<1x128x128xbf16> to vector<128x128xbf16>
    %cst_39 = arith.constant dense<0.000000e+00> : vector<128x256xf32>
    %56 = tpu.matmul %55, %53, %cst_39 {dimension_numbers = #tpu.dot_dimension_numbers<[1], [0], [0], [1], [0, 0, 1, 1], [], []>} : vector<128x128xbf16>, vector<128x256xbf16>, vector<128x256xf32> -> vector<128x256xf32>
    %c5_40 = arith.constant 5 : index
    %c0_41 = arith.constant 0 : index
    %c0_42 = arith.constant 0 : index
    %57 = vector.load %arg3[%c5_40, %c0_41, %c0_42] : memref<7x128x1xf32, #tpu.memory_space<vmem>>, vector<1x128x1xf32>
    %58 = vector.shape_cast %57 : vector<1x128x1xf32> to vector<128x1xf32>
    %59 = vector.broadcast %58 : vector<128x1xf32> to vector<128x256xf32>
    %60 = arith.addf %56, %59 : vector<128x256xf32>
    %cst_43 = arith.constant 0.000000e+00 : f32
    %61 = vector.broadcast %cst_43 : f32 to vector<128x256xf32>
    %62 = arith.maximumf %60, %61 : vector<128x256xf32>
    %63 = arith.truncf %62 : vector<128x256xf32> to vector<128x256xbf16>
    %c6 = arith.constant 6 : index
    %c0_44 = arith.constant 0 : index
    %c0_45 = arith.constant 0 : index
    %64 = vector.load %arg2[%c6, %c0_44, %c0_45] : memref<7x128x128xbf16, #tpu.memory_space<vmem>>, vector<1x128x128xbf16>
    %65 = vector.shape_cast %64 : vector<1x128x128xbf16> to vector<128x128xbf16>
    %cst_46 = arith.constant dense<0.000000e+00> : vector<128x256xf32>
    %66 = tpu.matmul %65, %63, %cst_46 {dimension_numbers = #tpu.dot_dimension_numbers<[1], [0], [0], [1], [0, 0, 1, 1], [], []>} : vector<128x128xbf16>, vector<128x256xbf16>, vector<128x256xf32> -> vector<128x256xf32>
    %c6_47 = arith.constant 6 : index
    %c0_48 = arith.constant 0 : index
    %c0_49 = arith.constant 0 : index
    %67 = vector.load %arg3[%c6_47, %c0_48, %c0_49] : memref<7x128x1xf32, #tpu.memory_space<vmem>>, vector<1x128x1xf32>
    %68 = vector.shape_cast %67 : vector<1x128x1xf32> to vector<128x1xf32>
    %69 = vector.broadcast %68 : vector<128x1xf32> to vector<128x256xf32>
    %70 = arith.addf %66, %69 : vector<128x256xf32>
    %cst_50 = arith.constant 0.000000e+00 : f32
    %71 = vector.broadcast %cst_50 : f32 to vector<128x256xf32>
    %72 = arith.maximumf %70, %71 : vector<128x256xf32>
    %73 = vector.extract_strided_slice %72 {offsets = [0, 0], sizes = [1, 256], strides = [1, 1]} : vector<128x256xf32> to vector<1x256xf32>
    %c0_51 = arith.constant 0 : index
    %c0_52 = arith.constant 0 : index
    %c0_53 = arith.constant 0 : index
    %74 = vector.load %arg4[%c0_51, %c0_52, %c0_53] : memref<1x1x256xf32, #tpu.memory_space<vmem>>, vector<1x1x256xf32>
    %75 = vector.shape_cast %74 : vector<1x1x256xf32> to vector<1x256xf32>
    %76 = vector.shape_cast %73 : vector<1x256xf32> to vector<1x1x256xf32>
    tpu.vector_store %arg4[%c0_51, %c0_52, %c0_53], %76 {strides = array<i32>} : memref<1x1x256xf32, #tpu.memory_space<vmem>>, vector<1x1x256xf32>,
    return
  }
  func.func @transform_0(%arg0: i32) -> (i32, i32) {
    %c0_i32 = arith.constant 0 : i32
    %c0_i32_0 = arith.constant 0 : i32
    return %c0_i32, %arg0 : i32, i32
  }
  func.func @transform_1(%arg0: i32) -> (i32, i32, i32) {
    %c0_i32 = arith.constant 0 : i32
    %c0_i32_0 = arith.constant 0 : i32
    %c0_i32_1 = arith.constant 0 : i32
    %c0_i32_2 = arith.constant 0 : i32
    return %c0_i32, %c0_i32_0, %c0_i32_1 : i32, i32, i32
  }
  func.func @transform_2(%arg0: i32) -> (i32, i32, i32) {
    %c0_i32 = arith.constant 0 : i32
    %c0_i32_0 = arith.constant 0 : i32
    %c0_i32_1 = arith.constant 0 : i32
    %c0_i32_2 = arith.constant 0 : i32
    return %c0_i32, %c0_i32_0, %c0_i32_1 : i32, i32, i32
  }
  func.func @transform_3(%arg0: i32) -> (i32, i32, i32) {
    %c0_i32 = arith.constant 0 : i32
    %c0_i32_0 = arith.constant 0 : i32
    %c0_i32_1 = arith.constant 0 : i32
    return %arg0, %c0_i32, %c0_i32_0 : i32, i32, i32
  }
}

</mosaic_0001>

<bundles_post_ra>
// kernel: critic_forward.1
= control target key start
LH: loop header
LB: loop body
LE: loop exit
PB: predicated region body
PF: predicated region fallthrough
CT: control target
= control target key end

     0   :  { %s2781_s12 = smov 0   ;;  %s3348_s0 = inlined_call_operand.vmem [shape: f32[8,512], index: 0, kind: input, shape index: {}]   ;;  %s3349_s1 = inlined_call_operand.vmem [shape: bf16[7,128,128], index: 1, kind: input, shape index: {}]   ;;  %s3350_s2 = inlined_call_operand.vmem [shape: f32[7,128,1], index: 2, kind: input, shape index: {}]   ;;  %s3351_s3 = inlined_call_operand.vmem [shape: f32[2,1,256], index: 3, kind: output, shape index: {}]  }
   0x1 LB: > { %s2787_s13 = sadd.s32 4294967295, %s2756_s12   ;;  %p2425_p0 = scmp.ge.s32.totalorder %s2756_s12, 1  ;;  %s2756_s12 = sphi %s2781_s12, %s13_s12  }
   0x2   : > { %p138_p1 = scmp.lt.s32.totalorder %s2756_s12, 3 }
   0x4   : > { %p139_p2 = pnand %p2425_p0, %p138_p1 }
   0x5   : > { %v195_v0 = vld [vmem:[%s3350_s2 + $0x10] sm:$0xff] (!%p139_p2)  ;;  %v193_v1 = vld [vmem:[%s3350_s2] sm:$0xff] (!%p139_p2)  ;;  %s2426_s18 = sshll.u32 (!%p139_p2), %s2787_s13, 1  ;;  %v2758_v2 = vmov (!%p139_p2), 0   ;;  %v196_v3 = vld [vmem:[%s3350_s2 + $0x18] sm:$0xff] (!%p139_p2)  ;;  %v2759_v9 = vmov (!%p139_p2), 0.0  }
   0x6   : > { %142 = sbr.rel (%p139_p2) target bundleno = 1964 (0x7ac), region = 32  ;;  %2693 = vset.pattern.permute.xlu1 (!%p139_p2), %v2758_v2  ;;  %2692 = vset.pattern.permute.xlu0 (!%p139_p2), %v2758_v2  ;;  %p162_p3 = scmp.lt.s32.totalorder (!%p139_p2), %s2426_s18, 3  ;;  %v194_v4 = vld [vmem:[%s3350_s2 + $0x8] sm:$0xff] (!%p139_p2)  ;;  %v197_v6 = vld [vmem:[%s3350_s2 + $0x20] sm:$0xff] (!%p139_p2)  ;;  %v200_v12 = vld [vmem:[%s3350_s2 + $0x38] sm:$0xff] (!%p139_p2) }
   0x7   : > { %221 = vperm.xlu1 (!%p139_p2), %2693, %v195_v0   ;;  %211 = vperm.xlu0 (!%p139_p2), %2692, %v193_v1   ;;  %v198_v5 = vld [vmem:[%s3350_s2 + $0x28] sm:$0xff] (!%p139_p2)  ;;  %v199_v13 = vld [vmem:[%s3350_s2 + $0x30] sm:$0xff] (!%p139_p2)  ;;  %v2694_v14 = vld [vmem:[%s3349_s1] sm:$0xff] (!%p139_p2)   ;;  %p167_p4 = scmp.lt.s32.totalorder (!%p139_p2), %s2787_s13, 1 }
   0x8   : > { %369 = vmatprep.mubr.bf16.mxu0 (!%p139_p2), %v2758_v2  ;;  %409 = vmatprep.mubr.bf16.mxu1 (!%p139_p2), %v2758_v2  ;;  %v2695_v15 = vld [vmem:[%s3349_s1 + $0x20] sm:$0xff] (!%p139_p2)   ;;  %v202_v16 = vld [vmem:[%s3350_s2 + $0x48] sm:$0xff] (!%p139_p2)  ;;  %v204_v18 = vld [vmem:[%s3350_s2 + $0x58] sm:$0xff] (!%p139_p2) }
   0x9   : > { %v201_v17 = vld [vmem:[%s3350_s2 + $0x40] sm:$0xff] (!%p139_p2)  ;;  %v203_v19 = vld [vmem:[%s3350_s2 + $0x50] sm:$0xff] (!%p139_p2)  ;;  %v2696_v20 = vld [vmem:[%s3349_s1 + $0x8] sm:$0xff] (!%p139_p2)  }
   0xa   : > { %v2697_v21 = vld [vmem:[%s3349_s1 + $0x28] sm:$0xff] (!%p139_p2)   ;;  %v205_v23 = vld [vmem:[%s3350_s2 + $0x60] sm:$0xff] (!%p139_p2)  ;;  %v208_v24 = vld [vmem:[%s3350_s2 + $0x78] sm:$0xff] (!%p139_p2) }
   0xb   : > { %226 = vperm.xlu1 (!%p139_p2), %2693, %v196_v3   ;;  %216 = vperm.xlu0 (!%p139_p2), %2692, %v194_v4   ;;  %v206_v22 = vld [vmem:[%s3350_s2 + $0x68] sm:$0xff] (!%p139_p2)  ;;  %v207_v25 = vld [vmem:[%s3350_s2 + $0x70] sm:$0xff] (!%p139_p2)  ;;  %v2453_v29 = vld [vmem:[%s3350_s2 + $0x80] sm:$0xff] (!%p139_p2) }
   0xc   : > { %v2698_v26 = vld [vmem:[%s3349_s1 + $0x10] sm:$0xff] (!%p139_p2)   ;;  %v2454_v28 = vld [vmem:[%s3350_s2 + $0x88] sm:$0xff] (!%p139_p2)  ;;  %v2456_v30 = vld [vmem:[%s3350_s2 + $0x98] sm:$0xff] (!%p139_p2) }
   0xd   : > { %s3353_s18 = smov (!%p162_p3, %s2426_s18), 3  ;;  %v2699_v27 = vld [vmem:[%s3349_s1 + $0x30] sm:$0xff]   ;;  %v2700_v32 = vld [vmem:[%s3349_s1 + $0x18] sm:$0xff]   ;;  %v2458_v34 = vld [vmem:[%s3350_s2 + $0xa8] sm:$0xff]  ;;  %s3355_s13 = smov (!%p167_p4, %s2787_s13), 1 }
   0xe   : > { %s2427_s25 = sshll.u32 %s3353_s18, 3  ;;  %v2455_v31 = vld [vmem:[%s3350_s2 + $0x90] sm:$0xff]  ;;  %v2701_v33 = vld [vmem:[%s3349_s1 + $0x38] sm:$0xff]   ;;  %v2457_v35 = vld [vmem:[%s3350_s2 + $0xa0] sm:$0xff] }
   0xf   : > { %s165_s30 = scalar_lea.vmem %s3348_s0, %s2427_s25  ;;  %236 = vperm.xlu1 %2693, %v198_v5   ;;  %231 = vperm.xlu0 %2692, %v197_v6   ;;  %v2460_v36 = vld [vmem:[%s3350_s2 + $0xb8] sm:$0xff]  ;;  %v2459_v37 = vld [vmem:[%s3350_s2 + $0xb0] sm:$0xff]  ;;  %v2462_v38 = vld [vmem:[%s3350_s2 + $0xc8] sm:$0xff]  ;;  %s2428_s25 = sshll.u32 %s3355_s13, 1 }
  0x10   : > { %v173_v7 = vld [vmem:[%s165_s30 + $0x8] sm:$0xff]  ;;  %v172_v8 = vld [vmem:[%s165_s30] sm:$0xff]  ;;  %v2464_v40 = vld [vmem:[%s3350_s2 + $0xd8] sm:$0xff]  ;;  %s170_s28 = scalar_lea.vmem %s3351_s3, %s2428_s25 }
  0x11   : > { %v175_v10 = vpack.c.bf16 %v2759_v9, %v173_v7  ;;  %v174_v11 = vpack.c.bf16 %v2759_v9, %v172_v8  ;;  %v2461_v39 = vld [vmem:[%s3350_s2 + $0xc0] sm:$0xff]  ;;  %v2463_v41 = vld [vmem:[%s3350_s2 + $0xd0] sm:$0xff]  ;;  %v2466_v42 = vld [vmem:[%s3350_s2 + $0xe8] sm:$0xff] }
  0x12   : > { %v2465_v43 = vld [vmem:[%s3350_s2 + $0xe0] sm:$0xff]  ;;  %v2468_v44 = vld [vmem:[%s3350_s2 + $0xf8] sm:$0xff]  ;;  %v2467_v45 = vld [vmem:[%s3350_s2 + $0xf0] sm:$0xff] }
  0x13   : > { %337 = vmatprep.subr.bf16.mxu0 %v175_v10  ;;  %2679 = vmatprep.subr.bf16.mxu1 %v175_v10  ;;  %v2494_v46 = vld [vmem:[%s3350_s2 + $0x108] sm:$0xff]  ;;  %v2493_v47 = vld [vmem:[%s3350_s2 + $0x100] sm:$0xff]  ;;  %v2496_v48 = vld [vmem:[%s3350_s2 + $0x118] sm:$0xff] }
  0x14   : > { %338 = vmatpush1.bf16.msra.mxu0 %v174_v11  ;;  %2680 = vmatpush1.bf16.msra.mxu1 %v174_v11  ;;  %v2495_v49 = vld [vmem:[%s3350_s2 + $0x110] sm:$0xff]  ;;  %v2498_v50 = vld [vmem:[%s3350_s2 + $0x128] sm:$0xff]  ;;  %v2497_v51 = vld [vmem:[%s3350_s2 + $0x120] sm:$0xff] }
  0x15   : > { %246 = vperm.xlu1 %2693, %v200_v12   ;;  %241 = vperm.xlu0 %2692, %v199_v13   ;;  %v2500_v52 = vld [vmem:[%s3350_s2 + $0x138] sm:$0xff]  ;;  %v2499_v53 = vld [vmem:[%s3350_s2 + $0x130] sm:$0xff]  ;;  %v2502_v54 = vld [vmem:[%s3350_s2 + $0x148] sm:$0xff] }
  0x16   : > { %v2501_v55 = vld [vmem:[%s3350_s2 + $0x140] sm:$0xff]  ;;  %v2504_v56 = vld [vmem:[%s3350_s2 + $0x158] sm:$0xff]  ;;  %v2503_v57 = vld [vmem:[%s3350_s2 + $0x150] sm:$0xff] }
  0x17   : > { %370 = vmatmul.mubr.bf16.vlgmr.msra.gmra.mrb[0].mxu0 %v2694_v14  ;;  %410 = vmatmul.mubr.bf16.vlgmr.msra.gmra.mrb[0].mxu1 %v2695_v15  ;;  %v2506_v58 = vld [vmem:[%s3350_s2 + $0x168] sm:$0xff]  ;;  %v2505_v59 = vld [vmem:[%s3350_s2 + $0x160] sm:$0xff]  ;;  %v2508_v60 = vld [vmem:[%s3350_s2 + $0x178] sm:$0xff] }
  0x18   : > { %379 = vmatprep.mubr.bf16.mxu0 %v2758_v2  ;;  %419 = vmatprep.mubr.bf16.mxu1 %v2758_v2  ;;  %v2507_v61 = vld [vmem:[%s3350_s2 + $0x170] sm:$0xff]  ;;  %v2534_v62 = vld [vmem:[%s3350_s2 + $0x188] sm:$0xff]  ;;  %v2533_v63 = vld [vmem:[%s3350_s2 + $0x180] sm:$0xff] }
  0x19   : > { %256 = vperm.xlu1 %2693, %v202_v16   ;;  %251 = vperm.xlu0 %2692, %v201_v17   ;;  %v2536_v0 = vld [vmem:[%s3350_s2 + $0x198] sm:$0xff]  ;;  %v2535_v1 = vld [vmem:[%s3350_s2 + $0x190] sm:$0xff]  ;;  %v2538_v3 = vld [vmem:[%s3350_s2 + $0x1a8] sm:$0xff] }
  0x1a   : > { %v2537_v4 = vld [vmem:[%s3350_s2 + $0x1a0] sm:$0xff]  ;;  %v2540_v5 = vld [vmem:[%s3350_s2 + $0x1b8] sm:$0xff]  ;;  %v2539_v6 = vld [vmem:[%s3350_s2 + $0x1b0] sm:$0xff] }
  0x1b   : > { %v2542_v7 = vld [vmem:[%s3350_s2 + $0x1c8] sm:$0xff]  ;;  %v2541_v8 = vld [vmem:[%s3350_s2 + $0x1c0] sm:$0xff]  ;;  %v2544_v9 = vld [vmem:[%s3350_s2 + $0x1d8] sm:$0xff] }
  0x1c   : > { %v2543_v10 = vld [vmem:[%s3350_s2 + $0x1d0] sm:$0xff]  ;;  %v2546_v11 = vld [vmem:[%s3350_s2 + $0x1e8] sm:$0xff]  ;;  %v2545_v12 = vld [vmem:[%s3350_s2 + $0x1e0] sm:$0xff] }
  0x1d   : > { %266 = vperm.xlu1 %2693, %v204_v18   ;;  %261 = vperm.xlu0 %2692, %v203_v19   ;;  %v2548_v13 = vld [vmem:[%s3350_s2 + $0x1f8] sm:$0xff]  ;;  %v2547_v14 = vld [vmem:[%s3350_s2 + $0x1f0] sm:$0xff]  ;;  %v2574_v15 = vld [vmem:[%s3350_s2 + $0x208] sm:$0xff] }
  0x1e   : > { %v2573_v16 = vld [vmem:[%s3350_s2 + $0x200] sm:$0xff]  ;;  %v2576_v17 = vld [vmem:[%s3350_s2 + $0x218] sm:$0xff]  ;;  %v2575_v18 = vld [vmem:[%s3350_s2 + $0x210] sm:$0xff] }
  0x1f   : > { %380 = vmatmul.mubr.bf16.gmra.mrb[4].mxu0 %v2696_v20  ;;  %420 = vmatmul.mubr.bf16.gmra.mrb[4].mxu1 %v2697_v21  ;;  %v2578_v19 = vld [vmem:[%s3350_s2 + $0x228] sm:$0xff]  ;;  %v2577_v20 = vld [vmem:[%s3350_s2 + $0x220] sm:$0xff]  ;;  %v2580_v21 = vld [vmem:[%s3350_s2 + $0x238] sm:$0xff] }
  0x20   : > { %389 = vmatprep.mubr.bf16.mxu0 %v2758_v2  ;;  %429 = vmatprep.mubr.bf16.mxu1 %v2758_v2 }
  0x21   : > { %276 = vperm.xlu1 %2693, %v206_v22   ;;  %271 = vperm.xlu0 %2692, %v205_v23   ;;  %v2579_v22 = vld [vmem:[%s3350_s2 + $0x230] sm:$0xff]  ;;  %v2582_v23 = vld [vmem:[%s3350_s2 + $0x248] sm:$0xff] }
  0x25   : > { %286 = vperm.xlu1 %2693, %v208_v24   ;;  %281 = vperm.xlu0 %2692, %v207_v25   ;;  %v2581_v24 = vld [vmem:[%s3350_s2 + $0x240] sm:$0xff]  ;;  %v2584_v25 = vld [vmem:[%s3350_s2 + $0x258] sm:$0xff] }
  0x27   : > { %390 = vmatmul.mubr.bf16.gmra.mrb[8].mxu0 %v2698_v26  ;;  %430 = vmatmul.mubr.bf16.gmra.mrb[8].mxu1 %v2699_v27  ;;  %v2583_v26 = vld [vmem:[%s3350_s2 + $0x250] sm:$0xff]  ;;  %v2586_v27 = vld [vmem:[%s3350_s2 + $0x268] sm:$0xff] }
  0x28   : > { %399 = vmatprep.mubr.bf16.mxu0 %v2758_v2  ;;  %439 = vmatprep.mubr.bf16.mxu1 %v2758_v2 }
  0x29   : > { %539 = vperm.xlu1 %2693, %v2454_v28   ;;  %534 = vperm.xlu0 %2692, %v2453_v29   ;;  %v2585_v28 = vld [vmem:[%s3350_s2 + $0x260] sm:$0xff]  ;;  %v2588_v29 = vld [vmem:[%s3350_s2 + $0x278] sm:$0xff] }
  0x2d   : > { %549 = vperm.xlu1 %2693, %v2456_v30   ;;  %544 = vperm.xlu0 %2692, %v2455_v31   ;;  %v2587_v30 = vld [vmem:[%s3350_s2 + $0x270] sm:$0xff]  ;;  %v2614_v31 = vld [vmem:[%s3350_s2 + $0x288] sm:$0xff] }
  0x2f   : > { %400 = vmatmul.mubr.bf16.gmra.mrb[12].mxu0 %v2700_v32  ;;  %440 = vmatmul.mubr.bf16.gmra.mrb[12].mxu1 %v2701_v33  ;;  %v2613_v32 = vld [vmem:[%s3350_s2 + $0x280] sm:$0xff]  ;;  %v2616_v33 = vld [vmem:[%s3350_s2 + $0x298] sm:$0xff] }
  0x30   : > { %692 = vmatprep.mubr.bf16.mxu1 %v2758_v2  ;;  %1015 = vmatprep.mubr.bf16.mxu0 %v2758_v2 }
  0x31   : > { %559 = vperm.xlu1 %2693, %v2458_v34   ;;  %554 = vperm.xlu0 %2692, %v2457_v35   ;;  %v2615_v34 = vld [vmem:[%s3350_s2 + $0x290] sm:$0xff]  ;;  %v2618_v35 = vld [vmem:[%s3350_s2 + $0x2a8] sm:$0xff] }
  0x35   : > { %569 = vperm.xlu1 %2693, %v2460_v36   ;;  %564 = vperm.xlu0 %2692, %v2459_v37   ;;  %v2617_v36 = vld [vmem:[%s3350_s2 + $0x2a0] sm:$0xff]  ;;  %v2620_v37 = vld [vmem:[%s3350_s2 + $0x2b8] sm:$0xff] }
  0x39   : > { %579 = vperm.xlu1 %2693, %v2462_v38   ;;  %574 = vperm.xlu0 %2692, %v2461_v39   ;;  %v2619_v38 = vld [vmem:[%s3350_s2 + $0x2b0] sm:$0xff]  ;;  %v2622_v39 = vld [vmem:[%s3350_s2 + $0x2c8] sm:$0xff] }
  0x3d   : > { %589 = vperm.xlu1 %2693, %v2464_v40   ;;  %584 = vperm.xlu0 %2692, %v2463_v41   ;;  %v2621_v40 = vld [vmem:[%s3350_s2 + $0x2c0] sm:$0xff]  ;;  %v2624_v41 = vld [vmem:[%s3350_s2 + $0x2d8] sm:$0xff] }
  0x41   : > { %599 = vperm.xlu1 %2693, %v2466_v42   ;;  %594 = vperm.xlu0 %2692, %v2465_v43   ;;  %v2623_v42 = vld [vmem:[%s3350_s2 + $0x2d0] sm:$0xff]  ;;  %v2626_v43 = vld [vmem:[%s3350_s2 + $0x2e8] sm:$0xff] }
  0x45   : > { %609 = vperm.xlu1 %2693, %v2468_v44   ;;  %604 = vperm.xlu0 %2692, %v2467_v45   ;;  %v2625_v44 = vld [vmem:[%s3350_s2 + $0x2e0] sm:$0xff]  ;;  %v2628_v45 = vld [vmem:[%s3350_s2 + $0x2f8] sm:$0xff] }
  0x49   : > { %862 = vperm.xlu1 %2693, %v2494_v46   ;;  %857 = vperm.xlu0 %2692, %v2493_v47   ;;  %v2627_v46 = vld [vmem:[%s3350_s2 + $0x2f0] sm:$0xff]  ;;  %v2653_v47 = vld [vmem:[%s3350_s2 + $0x300] sm:$0xff] }
  0x4d   : > { %872 = vperm.xlu1 %2693, %v2496_v48   ;;  %867 = vperm.xlu0 %2692, %v2495_v49  }
  0x51   : > { %882 = vperm.xlu1 %2693, %v2498_v50   ;;  %877 = vperm.xlu0 %2692, %v2497_v51  }
  0x55   : > { %892 = vperm.xlu1 %2693, %v2500_v52   ;;  %887 = vperm.xlu0 %2692, %v2499_v53  }
  0x59   : > { %902 = vperm.xlu1 %2693, %v2502_v54   ;;  %897 = vperm.xlu0 %2692, %v2501_v55  }
  0x5d   : > { %912 = vperm.xlu1 %2693, %v2504_v56   ;;  %907 = vperm.xlu0 %2692, %v2503_v57  }
  0x61   : > { %922 = vperm.xlu1 %2693, %v2506_v58   ;;  %917 = vperm.xlu0 %2692, %v2505_v59  }
  0x65   : > { %932 = vperm.xlu1 %2693, %v2508_v60   ;;  %927 = vperm.xlu0 %2692, %v2507_v61  }
  0x69   : > { %1185 = vperm.xlu1 %2693, %v2534_v62   ;;  %1180 = vperm.xlu0 %2692, %v2533_v63  }
  0x6d   : > { %1195 = vperm.xlu1 %2693, %v2536_v0   ;;  %1190 = vperm.xlu0 %2692, %v2535_v1  }
  0x71   : > { %1205 = vperm.xlu1 %2693, %v2538_v3   ;;  %1200 = vperm.xlu0 %2692, %v2537_v4  }
  0x75   : > { %1215 = vperm.xlu1 %2693, %v2540_v5   ;;  %1210 = vperm.xlu0 %2692, %v2539_v6  }
  0x79   : > { %1225 = vperm.xlu1 %2693, %v2542_v7   ;;  %1220 = vperm.xlu0 %2692, %v2541_v8  }
  0x7d   : > { %1235 = vperm.xlu1 %2693, %v2544_v9   ;;  %1230 = vperm.xlu0 %2692, %v2543_v10  }
  0x81   : > { %1245 = vperm.xlu1 %2693, %v2546_v11   ;;  %1240 = vperm.xlu0 %2692, %v2545_v12  }
  0x85   : > { %1255 = vperm.xlu1 %2693, %v2548_v13   ;;  %1250 = vperm.xlu0 %2692, %v2547_v14  }
  0x86   : > { %v222_v48 = vpop.permute.xlu1 %221  ;;  %v212_v49 = vpop.permute.xlu0 %211 }
  0x89   : > { %1508 = vperm.xlu1 %2693, %v2574_v15   ;;  %1503 = vperm.xlu0 %2692, %v2573_v16  }
  0x8a   : > { %v227_v50 = vpop.permute.xlu1 %226  ;;  %v217_v51 = vpop.permute.xlu0 %216 }
  0x8d   : > { %1518 = vperm.xlu1 %2693, %v2576_v17   ;;  %1513 = vperm.xlu0 %2692, %v2575_v18  }
  0x8e   : > { %v3122_v52 = vpop.permute.xlu1 %236  ;;  %v3124_v53 = vpop.permute.xlu0 %231 }
  0x91   : > { %1528 = vperm.xlu1 %2693, %v2578_v19   ;;  %1523 = vperm.xlu0 %2692, %v2577_v20  }
  0x94   : > { %v3126_v54 = vpop.permute.xlu1 %246  ;;  %v3128_v55 = vpop.permute.xlu0 %241 }
  0x95   : > { %1538 = vperm.xlu1 %2693, %v2580_v21   ;;  %1533 = vperm.xlu0 %2692, %v2579_v22  }
  0x98   : > { %v257_v56 = vpop.permute.xlu1 %256  ;;  %v252_v57 = vpop.permute.xlu0 %251 }
  0x99   : > { %1548 = vperm.xlu1 %2693, %v2582_v23   ;;  %1543 = vperm.xlu0 %2692, %v2581_v24  }
  0x9c   : > { %v267_v18 = vpop.permute.xlu1 %266  ;;  %v262_v22 = vpop.permute.xlu0 %261 }
  0x9d   : > { %1558 = vperm.xlu1 %2693, %v2584_v25   ;;  %1553 = vperm.xlu0 %2692, %v2583_v26  }
  0xa1   : > { %1568 = vperm.xlu1 %2693, %v2586_v27   ;;  %1563 = vperm.xlu0 %2692, %v2585_v28  }
  0xa5   : > { %1578 = vperm.xlu1 %2693, %v2588_v29   ;;  %1573 = vperm.xlu0 %2692, %v2587_v30  }
  0xa9   : > { %1831 = vperm.xlu1 %2693, %v2614_v31   ;;  %1826 = vperm.xlu0 %2692, %v2613_v32  }
  0xad   : > { %1841 = vperm.xlu1 %2693, %v2616_v33   ;;  %1836 = vperm.xlu0 %2692, %v2615_v34  }
  0xb1   : > { %1851 = vperm.xlu1 %2693, %v2618_v35   ;;  %1846 = vperm.xlu0 %2692, %v2617_v36  }
  0xb5   : > { %1861 = vperm.xlu1 %2693, %v2620_v37   ;;  %1856 = vperm.xlu0 %2692, %v2619_v38  }
  0xb9   : > { %1871 = vperm.xlu1 %2693, %v2622_v39   ;;  %1866 = vperm.xlu0 %2692, %v2621_v40  }
  0xbd   : > { %1881 = vperm.xlu1 %2693, %v2624_v41   ;;  %1876 = vperm.xlu0 %2692, %v2623_v42  }
  0xc1   : > { %1891 = vperm.xlu1 %2693, %v2626_v43   ;;  %1886 = vperm.xlu0 %2692, %v2625_v44  }
  0xc5   : > { %1901 = vperm.xlu1 %2693, %v2628_v45   ;;  %1896 = vperm.xlu0 %2692, %v2627_v46  }
  0xc9   : > { %2149 = vperm.xlu0 %2692, %v2653_v47  }
  0xea   : > { %v371_v58 = vpop.f32.mrb[0].mxu0  ;;  %v411_v59 = vpop.f32.mrb[0].mxu1 }
  0xeb   : > { %v372_v60 = vadd.f32 %v371_v58, %v212_v49  ;;  %v373_v61 = vpop.f32.mrb[1].mxu0  ;;  %v412_v62 = vadd.f32 %v411_v59, %v252_v57  ;;  %v413_v63 = vpop.f32.mrb[1].mxu1 }
  0xec   : > { %v374_v0 = vadd.f32 %v373_v61, %v212_v49  ;;  %v375_v1 = vpop.f32.mrb[2].mxu0  ;;  %v414_v3 = vadd.f32 %v413_v63, %v252_v57  ;;  %v415_v4 = vpop.f32.mrb[2].mxu1 }
  0xed   : > { %v376_v5 = vadd.f32 %v375_v1, %v217_v51  ;;  %v377_v6 = vpop.f32.mrb[3].mxu0  ;;  %v466_v7 = vmax.f32 %v412_v62, 0.0  ;;  %v416_v8 = vadd.f32 %v415_v4, %v257_v56  ;;  %v450_v9 = vmax.f32 %v372_v60, 0.0  ;;  %v417_v11 = vpop.f32.mrb[3].mxu1 }
  0xee   : > { %v378_v10 = vadd.f32 %v377_v6, %v217_v51  ;;  %v467_v13 = vmax.f32 %v414_v3, 0.0  ;;  %v418_v15 = vadd.f32 %v417_v11, %v257_v56  ;;  %v451_v16 = vmax.f32 %v374_v0, 0.0  ;;  %v277_v51 = vpop.permute.xlu1 %276  ;;  %v272_v59 = vpop.permute.xlu0 %271 }
  0xef   : > { %v452_v12 = vmax.f32 %v376_v5, 0.0  ;;  %v468_v14 = vmax.f32 %v416_v8, 0.0 }
  0xf0   : > { %v453_v17 = vmax.f32 %v378_v10, 0.0  ;;  %v469_v21 = vmax.f32 %v418_v15, 0.0 }
  0xf1   : > { %v482_v19 = vpack.c.bf16 %v452_v12, %v450_v9  ;;  %v3130_v20 = vpack.c.bf16 %v468_v14, %v466_v7 }
  0xf2   : > { %v483_v23 = vpack.c.bf16 %v453_v17, %v451_v16  ;;  %v381_v24 = vpop.f32.mrb[4].mxu0  ;;  %v3132_v25 = vpack.c.bf16 %v469_v21, %v467_v13  ;;  %v421_v27 = vpop.f32.mrb[4].mxu1 }
  0xf3   : > { %v382_v26 = vadd.f32 %v381_v24, %v222_v48  ;;  %v383_v28 = vpop.f32.mrb[5].mxu0  ;;  %v422_v29 = vadd.f32 %v421_v27, %v262_v22  ;;  %v423_v31 = vpop.f32.mrb[5].mxu1 }
  0xf4   : > { %v384_v30 = vadd.f32 %v383_v28, %v222_v48  ;;  %v385_v32 = vpop.f32.mrb[6].mxu0  ;;  %660 = vmatprep.subr.bf16.mxu1 %v483_v23  ;;  %v424_v33 = vadd.f32 %v423_v31, %v262_v22  ;;  %v425_v35 = vpop.f32.mrb[6].mxu1 }
  0xf5   : > { %v386_v34 = vadd.f32 %v385_v32, %v227_v50  ;;  %v387_v36 = vpop.f32.mrb[7].mxu0  ;;  %661 = vmatpush1.bf16.msra.mxu1 %v482_v19  ;;  %v470_v37 = vmax.f32 %v422_v29, 0.0  ;;  %v426_v38 = vadd.f32 %v425_v35, %v267_v18  ;;  %v427_v40 = vpop.f32.mrb[7].mxu1  ;;  %v454_v41 = vmax.f32 %v382_v26, 0.0 }
  0xf6   : > { %v388_v39 = vadd.f32 %v387_v36, %v227_v50  ;;  %v471_v42 = vmax.f32 %v424_v33, 0.0  ;;  %v428_v44 = vadd.f32 %v427_v40, %v267_v18  ;;  %v455_v45 = vmax.f32 %v384_v30, 0.0  ;;  %v287_v24 = vpop.permute.xlu1 %286  ;;  %v282_v26 = vpop.permute.xlu0 %281 }
  0xf7   : > { %v456_v43 = vmax.f32 %v386_v34, 0.0  ;;  %v472_v46 = vmax.f32 %v426_v38, 0.0 }
  0xf8   : > { %v457_v47 = vmax.f32 %v388_v39, 0.0  ;;  %v473_v49 = vmax.f32 %v428_v44, 0.0 }
  0xf9   : > { %v484_v48 = vpack.c.bf16 %v456_v43, %v454_v41  ;;  %v3134_v56 = vpack.c.bf16 %v472_v46, %v470_v37 }
  0xfa   : > { %v485_v57 = vpack.c.bf16 %v457_v47, %v455_v45  ;;  %v391_v58 = vpop.f32.mrb[8].mxu0  ;;  %v3136_v60 = vpack.c.bf16 %v473_v49, %v471_v42  ;;  %v431_v61 = vpop.f32.mrb[8].mxu1 }
  0xfb   : > { %v392_v50 = vadd.f32 %v391_v58, %v3124_v53  ;;  %v432_v62 = vadd.f32 %v431_v61, %v272_v59  ;;  %v393_v63 = vpop.f32.mrb[9].mxu0  ;;  %v433_v0 = vpop.f32.mrb[9].mxu1  ;;  %v2708_v61 = vld [vmem:[%s3349_s1 + $0x70] sm:$0xff]  }
  0xfc   : > { %662 = vmatprep.subr.bf16.mxu1 %v485_v57  ;;  %v394_v1 = vadd.f32 %v393_v63, %v3124_v53  ;;  %v434_v3 = vadd.f32 %v433_v0, %v272_v59  ;;  %v395_v4 = vpop.f32.mrb[10].mxu0  ;;  %v435_v5 = vpop.f32.mrb[10].mxu1  ;;  %v2706_v59 = vld [vmem:[%s3349_s1 + $0x60] sm:$0xff]  }
  0xfd   : > { %663 = vmatpush1.bf16.msra.mxu1 %v484_v48  ;;  %v396_v6 = vadd.f32 %v395_v4, %v3122_v52  ;;  %v436_v7 = vadd.f32 %v435_v5, %v277_v51  ;;  %v397_v8 = vpop.f32.mrb[11].mxu0  ;;  %v437_v9 = vpop.f32.mrb[11].mxu1  ;;  %v458_v12 = vmax.f32 %v392_v50, 0.0  ;;  %v474_v13 = vmax.f32 %v432_v62, 0.0  ;;  %v2709_v50 = vld [vmem:[%s3349_s1 + $0x78] sm:$0xff]  }
  0xfe   : > { %v398_v10 = vadd.f32 %v397_v8, %v3122_v52  ;;  %v438_v11 = vadd.f32 %v437_v9, %v277_v51  ;;  %v459_v16 = vmax.f32 %v394_v1, 0.0  ;;  %v475_v17 = vmax.f32 %v434_v3, 0.0  ;;  %v535_v62 = vpop.permute.xlu0 %534  ;;  %v540_v3 = vpop.permute.xlu1 %539 }
  0xff   : > { %v460_v14 = vmax.f32 %v396_v6, 0.0  ;;  %v476_v15 = vmax.f32 %v436_v7, 0.0 }
 0x100   : > { %v461_v18 = vmax.f32 %v398_v10, 0.0  ;;  %v477_v53 = vmax.f32 %v438_v11, 0.0 }
 0x101   : > { %v486_v19 = vpack.c.bf16 %v460_v14, %v458_v12  ;;  %v494_v21 = vpack.c.bf16 %v476_v15, %v474_v13 }
 0x102   : > { %v401_v22 = vpop.f32.mrb[12].mxu0  ;;  %v441_v23 = vpop.f32.mrb[12].mxu1  ;;  %v487_v27 = vpack.c.bf16 %v461_v18, %v459_v16  ;;  %v495_v28 = vpack.c.bf16 %v477_v53, %v475_v17 }
 0x103   : > { %v402_v29 = vadd.f32 %v401_v22, %v3128_v55  ;;  %v442_v52 = vadd.f32 %v441_v23, %v282_v26  ;;  %v403_v30 = vpop.f32.mrb[13].mxu0  ;;  %v443_v31 = vpop.f32.mrb[13].mxu1 }
 0x104   : > { %v404_v32 = vadd.f32 %v403_v30, %v3128_v55  ;;  %v444_v33 = vadd.f32 %v443_v31, %v282_v26  ;;  %v405_v34 = vpop.f32.mrb[14].mxu0  ;;  %v445_v35 = vpop.f32.mrb[14].mxu1  ;;  %664 = vmatprep.subr.bf16.mxu1 %v487_v27 }
 0x105   : > { %v406_v36 = vadd.f32 %v405_v34, %v3126_v54  ;;  %v446_v37 = vadd.f32 %v445_v35, %v287_v24  ;;  %v407_v38 = vpop.f32.mrb[15].mxu0  ;;  %v447_v39 = vpop.f32.mrb[15].mxu1  ;;  %665 = vmatpush1.bf16.msra.mxu1 %v486_v19  ;;  %v462_v42 = vmax.f32 %v402_v29, 0.0  ;;  %v478_v43 = vmax.f32 %v442_v52, 0.0 }
 0x106   : > { %v408_v40 = vadd.f32 %v407_v38, %v3126_v54  ;;  %v448_v41 = vadd.f32 %v447_v39, %v287_v24  ;;  %v463_v46 = vmax.f32 %v404_v32, 0.0  ;;  %v479_v47 = vmax.f32 %v444_v33, 0.0  ;;  %v2702_v54 = vld [vmem:[%s3349_s1 + $0x40] sm:$0xff]   ;;  %v545_v14 = vpop.permute.xlu0 %544  ;;  %v550_v53 = vpop.permute.xlu1 %549 }
 0x107   : > { %v464_v44 = vmax.f32 %v406_v36, 0.0  ;;  %v480_v45 = vmax.f32 %v446_v37, 0.0 }
 0x108   : > { %v465_v55 = vmax.f32 %v408_v40, 0.0  ;;  %v481_v48 = vmax.f32 %v448_v41, 0.0 }
 0x109   : > { %v488_v49 = vpack.c.bf16 %v464_v44, %v462_v42  ;;  %v496_v51 = vpack.c.bf16 %v480_v45, %v478_v43 }
 0x10a   : > { %v489_v57 = vpack.c.bf16 %v465_v55, %v463_v46  ;;  %v497_v58 = vpack.c.bf16 %v481_v48, %v479_v47  ;;  %v555_v30 = vpop.permute.xlu0 %554  ;;  %v560_v35 = vpop.permute.xlu1 %559 }
 0x10c   : > { %666 = vmatprep.subr.bf16.mxu1 %v489_v57 }
 0x10d   : > { %667 = vmatpush1.bf16.msra.mxu1 %v488_v49 }
 0x10e   : > { %668 = vmatprep.subr.bf16.mxu1 %v3132_v25  ;;  %v2703_v25 = vld [vmem:[%s3349_s1 + $0x48] sm:$0xff]   ;;  %v565_v46 = vpop.permute.xlu0 %564 }
 0x111   : > { %669 = vmatpush1.bf16.msra.mxu1 %v3130_v20  ;;  %v2704_v20 = vld [vmem:[%s3349_s1 + $0x50] sm:$0xff]  }
 0x112   : > { %670 = vmatprep.subr.bf16.mxu1 %v3136_v60  ;;  %v2707_v60 = vld [vmem:[%s3349_s1 + $0x68] sm:$0xff]  }
 0x115   : > { %671 = vmatpush1.bf16.msra.mxu1 %v3134_v56  ;;  %v2705_v56 = vld [vmem:[%s3349_s1 + $0x58] sm:$0xff]  }
 0x116   : > { %672 = vmatprep.subr.bf16.mxu1 %v495_v28 }
 0x119   : > { %673 = vmatpush1.bf16.msra.mxu1 %v494_v21 }
 0x11a   : > { %674 = vmatprep.subr.bf16.mxu1 %v497_v58 }
 0x11d   : > { %675 = vmatpush1.bf16.msra.mxu1 %v496_v51  ;;  %v570_v51 = vpop.permute.xlu1 %569 }
 0x120   : > { %693 = vmatmul.mubr.bf16.vlgmr.msra.gmra.mrb[16].mxu1 %v2702_v54 }
 0x121   : > { %702 = vmatprep.mubr.bf16.mxu1 %v2758_v2 }
 0x128   : > { %703 = vmatmul.mubr.bf16.gmra.mrb[20].mxu1 %v2703_v25 }
 0x129   : > { %712 = vmatprep.mubr.bf16.mxu1 %v2758_v2 }
 0x130   : > { %713 = vmatmul.mubr.bf16.gmra.mrb[24].mxu1 %v2704_v20 }
 0x131   : > { %722 = vmatprep.mubr.bf16.mxu1 %v2758_v2 }
 0x138   : > { %723 = vmatmul.mubr.bf16.gmra.mrb[28].mxu1 %v2705_v56 }
 0x139   : > { %732 = vmatprep.mubr.bf16.mxu1 %v2758_v2 }
 0x140   : > { %733 = vmatmul.mubr.bf16.gmra.mrb[32].mxu1 %v2706_v59 }
 0x141   : > { %742 = vmatprep.mubr.bf16.mxu1 %v2758_v2 }
 0x148   : > { %743 = vmatmul.mubr.bf16.gmra.mrb[36].mxu1 %v2707_v60 }
 0x149   : > { %752 = vmatprep.mubr.bf16.mxu1 %v2758_v2 }
 0x150   : > { %753 = vmatmul.mubr.bf16.gmra.mrb[40].mxu1 %v2708_v61 }
 0x151   : > { %762 = vmatprep.mubr.bf16.mxu1 %v2758_v2 }
 0x158   : > { %763 = vmatmul.mubr.bf16.gmra.mrb[44].mxu1 %v2709_v50 }
 0x159   : > { %1338 = vmatprep.mubr.bf16.mxu1 %v2758_v2 }
 0x1f3   : > { %v694_v63 = vpop.f32.mrb[16].mxu1 }
 0x1f4   : > { %v695_v0 = vadd.f32 %v694_v63, %v535_v62  ;;  %v696_v1 = vpop.f32.mrb[17].mxu1 }
 0x1f5   : > { %v697_v4 = vadd.f32 %v696_v1, %v535_v62  ;;  %v698_v5 = vpop.f32.mrb[18].mxu1  ;;  %v575_v62 = vpop.permute.xlu0 %574 }
 0x1f6   : > { %v699_v6 = vadd.f32 %v698_v5, %v540_v3  ;;  %v700_v7 = vpop.f32.mrb[19].mxu1  ;;  %v773_v9 = vmax.f32 %v695_v0, 0.0 }
 0x1f7   : > { %v701_v8 = vadd.f32 %v700_v7, %v540_v3  ;;  %v774_v11 = vmax.f32 %v697_v4, 0.0  ;;  %v580_v4 = vpop.permute.xlu1 %579 }
 0x1f8   : > { %v775_v10 = vmax.f32 %v699_v6, 0.0 }
 0x1f9   : > { %v776_v12 = vmax.f32 %v701_v8, 0.0 }
 0x1fa   : > { %v805_v13 = vpack.c.bf16 %v775_v10, %v773_v9 }
 0x1fb   : > { %v806_v15 = vpack.c.bf16 %v776_v12, %v774_v11  ;;  %v704_v16 = vpop.f32.mrb[20].mxu1 }
 0x1fc   : > { %v705_v17 = vadd.f32 %v704_v16, %v545_v14  ;;  %v706_v18 = vpop.f32.mrb[21].mxu1 }
 0x1fd   : > { %v707_v19 = vadd.f32 %v706_v18, %v545_v14  ;;  %v708_v21 = vpop.f32.mrb[22].mxu1  ;;  %983 = vmatprep.subr.bf16.mxu0 %v806_v15  ;;  %v585_v15 = vpop.permute.xlu0 %584 }
 0x1fe   : > { %v709_v22 = vadd.f32 %v708_v21, %v550_v53  ;;  %v710_v23 = vpop.f32.mrb[23].mxu1  ;;  %984 = vmatpush1.bf16.msra.mxu0 %v805_v13  ;;  %v777_v26 = vmax.f32 %v705_v17, 0.0 }
 0x1ff   : > { %v711_v24 = vadd.f32 %v710_v23, %v550_v53  ;;  %v778_v28 = vmax.f32 %v707_v19, 0.0  ;;  %v590_v19 = vpop.permute.xlu1 %589 }
 0x200   : > { %v779_v27 = vmax.f32 %v709_v22, 0.0 }
 0x201   : > { %v780_v29 = vmax.f32 %v711_v24, 0.0 }
 0x202   : > { %v807_v52 = vpack.c.bf16 %v779_v27, %v777_v26 }
 0x203   : > { %v808_v31 = vpack.c.bf16 %v780_v29, %v778_v28  ;;  %v714_v32 = vpop.f32.mrb[24].mxu1 }
 0x204   : > { %v715_v33 = vadd.f32 %v714_v32, %v555_v30  ;;  %v716_v34 = vpop.f32.mrb[25].mxu1 }
 0x205   : > { %v717_v36 = vadd.f32 %v716_v34, %v555_v30  ;;  %v718_v37 = vpop.f32.mrb[26].mxu1  ;;  %985 = vmatprep.subr.bf16.mxu0 %v808_v31  ;;  %v595_v31 = vpop.permute.xlu0 %594 }
 0x206   : > { %v719_v38 = vadd.f32 %v718_v37, %v560_v35  ;;  %v720_v39 = vpop.f32.mrb[27].mxu1  ;;  %986 = vmatpush1.bf16.msra.mxu0 %v807_v52  ;;  %v781_v41 = vmax.f32 %v715_v33, 0.0 }
 0x207   : > { %v721_v40 = vadd.f32 %v720_v39, %v560_v35  ;;  %v782_v43 = vmax.f32 %v717_v36, 0.0  ;;  %v600_v36 = vpop.permute.xlu1 %599 }
 0x208   : > { %v783_v42 = vmax.f32 %v719_v38, 0.0 }
 0x209   : > { %v784_v44 = vmax.f32 %v721_v40, 0.0 }
 0x20a   : > { %v809_v45 = vpack.c.bf16 %v783_v42, %v781_v41 }
 0x20b   : > { %v810_v47 = vpack.c.bf16 %v784_v44, %v782_v43  ;;  %v724_v55 = vpop.f32.mrb[28].mxu1 }
 0x20c   : > { %v725_v48 = vadd.f32 %v724_v55, %v565_v46  ;;  %v726_v49 = vpop.f32.mrb[29].mxu1 }
 0x20d   : > { %v727_v57 = vadd.f32 %v726_v49, %v565_v46  ;;  %v728_v58 = vpop.f32.mrb[30].mxu1  ;;  %987 = vmatprep.subr.bf16.mxu0 %v810_v47  ;;  %v605_v47 = vpop.permute.xlu0 %604 }
 0x20e   : > { %v729_v54 = vadd.f32 %v728_v58, %v570_v51  ;;  %v730_v25 = vpop.f32.mrb[31].mxu1  ;;  %988 = vmatpush1.bf16.msra.mxu0 %v809_v45  ;;  %v785_v56 = vmax.f32 %v725_v48, 0.0 }
 0x20f   : > { %v731_v20 = vadd.f32 %v730_v25, %v570_v51  ;;  %v786_v60 = vmax.f32 %v727_v57, 0.0  ;;  %v610_v57 = vpop.permute.xlu1 %609 }
 0x210   : > { %v787_v59 = vmax.f32 %v729_v54, 0.0 }
 0x211   : > { %v788_v61 = vmax.f32 %v731_v20, 0.0 }
 0x212   : > { %v811_v50 = vpack.c.bf16 %v787_v59, %v785_v56 }
 0x213   : > { %v812_v63 = vpack.c.bf16 %v788_v61, %v786_v60  ;;  %v734_v0 = vpop.f32.mrb[32].mxu1 }
 0x214   : > { %v735_v1 = vadd.f32 %v734_v0, %v575_v62  ;;  %v736_v3 = vpop.f32.mrb[33].mxu1  ;;  %v2710_v0 = vld [vmem:[%s3349_s1 + $0x80] sm:$0xff]  }
 0x215   : > { %v737_v5 = vadd.f32 %v736_v3, %v575_v62  ;;  %v738_v6 = vpop.f32.mrb[34].mxu1  ;;  %989 = vmatprep.subr.bf16.mxu0 %v812_v63  ;;  %v2712_v3 = vld [vmem:[%s3349_s1 + $0x90] sm:$0xff]  }
 0x216   : > { %v739_v7 = vadd.f32 %v738_v6, %v580_v4  ;;  %v740_v8 = vpop.f32.mrb[35].mxu1  ;;  %990 = vmatpush1.bf16.msra.mxu0 %v811_v50  ;;  %v789_v10 = vmax.f32 %v735_v1, 0.0  ;;  %v2711_v1 = vld [vmem:[%s3349_s1 + $0x88] sm:$0xff]  }
 0x217   : > { %v741_v9 = vadd.f32 %v740_v8, %v580_v4  ;;  %v790_v12 = vmax.f32 %v737_v5, 0.0  ;;  %v2713_v4 = vld [vmem:[%s3349_s1 + $0x98] sm:$0xff]   ;;  %v2714_v5 = vld [vmem:[%s3349_s1 + $0xa0] sm:$0xff]   ;;  %v2715_v6 = vld [vmem:[%s3349_s1 + $0xa8] sm:$0xff]  }
 0x218   : > { %v791_v11 = vmax.f32 %v739_v7, 0.0  ;;  %v2716_v7 = vld [vmem:[%s3349_s1 + $0xb0] sm:$0xff]   ;;  %v2717_v8 = vld [vmem:[%s3349_s1 + $0xb8] sm:$0xff]  }
 0x219   : > { %v792_v13 = vmax.f32 %v741_v9, 0.0  ;;  %v858_v9 = vpop.permute.xlu0 %857 }
 0x21a   : > { %v813_v14 = vpack.c.bf16 %v791_v11, %v789_v10 }
 0x21b   : > { %v814_v16 = vpack.c.bf16 %v792_v13, %v790_v12  ;;  %v744_v17 = vpop.f32.mrb[36].mxu1  ;;  %v863_v13 = vpop.permute.xlu1 %862 }
 0x21c   : > { %v745_v18 = vadd.f32 %v744_v17, %v585_v15  ;;  %v746_v53 = vpop.f32.mrb[37].mxu1 }
 0x21d   : > { %v747_v21 = vadd.f32 %v746_v53, %v585_v15  ;;  %v748_v22 = vpop.f32.mrb[38].mxu1  ;;  %991 = vmatprep.subr.bf16.mxu0 %v814_v16 }
 0x21e   : > { %v749_v23 = vadd.f32 %v748_v22, %v590_v19  ;;  %v750_v24 = vpop.f32.mrb[39].mxu1  ;;  %992 = vmatpush1.bf16.msra.mxu0 %v813_v14  ;;  %v793_v27 = vmax.f32 %v745_v18, 0.0 }
 0x21f   : > { %v751_v26 = vadd.f32 %v750_v24, %v590_v19  ;;  %v794_v29 = vmax.f32 %v747_v21, 0.0  ;;  %v868_v24 = vpop.permute.xlu0 %867 }
 0x220   : > { %v795_v28 = vmax.f32 %v749_v23, 0.0 }
 0x221   : > { %v796_v52 = vmax.f32 %v751_v26, 0.0 }
 0x222   : > { %v815_v30 = vpack.c.bf16 %v795_v28, %v793_v27 }
 0x223   : > { %v816_v32 = vpack.c.bf16 %v796_v52, %v794_v29  ;;  %v754_v33 = vpop.f32.mrb[40].mxu1  ;;  %v873_v52 = vpop.permute.xlu1 %872 }
 0x224   : > { %v755_v34 = vadd.f32 %v754_v33, %v595_v31  ;;  %v756_v35 = vpop.f32.mrb[41].mxu1 }
 0x225   : > { %v757_v37 = vadd.f32 %v756_v35, %v595_v31  ;;  %v758_v38 = vpop.f32.mrb[42].mxu1  ;;  %993 = vmatprep.subr.bf16.mxu0 %v816_v32 }
 0x226   : > { %v759_v39 = vadd.f32 %v758_v38, %v600_v36  ;;  %v760_v40 = vpop.f32.mrb[43].mxu1  ;;  %994 = vmatpush1.bf16.msra.mxu0 %v815_v30  ;;  %v797_v42 = vmax.f32 %v755_v34, 0.0 }
 0x227   : > { %v761_v41 = vadd.f32 %v760_v40, %v600_v36  ;;  %v798_v44 = vmax.f32 %v757_v37, 0.0  ;;  %v878_v40 = vpop.permute.xlu0 %877 }
 0x228   : > { %v799_v43 = vmax.f32 %v759_v39, 0.0 }
 0x229   : > { %v800_v45 = vmax.f32 %v761_v41, 0.0 }
 0x22a   : > { %v817_v46 = vpack.c.bf16 %v799_v43, %v797_v42 }
 0x22b   : > { %v818_v55 = vpack.c.bf16 %v800_v45, %v798_v44  ;;  %v764_v48 = vpop.f32.mrb[44].mxu1  ;;  %v883_v45 = vpop.permute.xlu1 %882 }
 0x22c   : > { %v765_v49 = vadd.f32 %v764_v48, %v605_v47  ;;  %v766_v51 = vpop.f32.mrb[45].mxu1 }
 0x22d   : > { %v767_v58 = vadd.f32 %v766_v51, %v605_v47  ;;  %v768_v54 = vpop.f32.mrb[46].mxu1  ;;  %995 = vmatprep.subr.bf16.mxu0 %v818_v55 }
 0x22e   : > { %v769_v25 = vadd.f32 %v768_v54, %v610_v57  ;;  %v770_v20 = vpop.f32.mrb[47].mxu1  ;;  %996 = vmatpush1.bf16.msra.mxu0 %v817_v46  ;;  %v801_v59 = vmax.f32 %v765_v49, 0.0 }
 0x22f   : > { %v771_v56 = vadd.f32 %v770_v20, %v610_v57  ;;  %v802_v61 = vmax.f32 %v767_v58, 0.0  ;;  %v888_v20 = vpop.permute.xlu0 %887 }
 0x230   : > { %v803_v60 = vmax.f32 %v769_v25, 0.0 }
 0x231   : > { %v804_v50 = vmax.f32 %v771_v56, 0.0 }
 0x232   : > { %v819_v62 = vpack.c.bf16 %v803_v60, %v801_v59 }
 0x233   : > { %v820_v63 = vpack.c.bf16 %v804_v50, %v802_v61  ;;  %v893_v50 = vpop.permute.xlu1 %892 }
 0x235   : > { %997 = vmatprep.subr.bf16.mxu0 %v820_v63 }
 0x236   : > { %998 = vmatpush1.bf16.msra.mxu0 %v819_v62 }
 0x239   : > { %1016 = vmatmul.mubr.bf16.vlgmr.msra.gmra.mrb[16].mxu0 %v2710_v0 }
 0x23a   : > { %1025 = vmatprep.mubr.bf16.mxu0 %v2758_v2 }
 0x241   : > { %1026 = vmatmul.mubr.bf16.gmra.mrb[20].mxu0 %v2711_v1 }
 0x242   : > { %1035 = vmatprep.mubr.bf16.mxu0 %v2758_v2 }
 0x249   : > { %1036 = vmatmul.mubr.bf16.gmra.mrb[24].mxu0 %v2712_v3 }
 0x24a   : > { %1045 = vmatprep.mubr.bf16.mxu0 %v2758_v2 }
 0x251   : > { %1046 = vmatmul.mubr.bf16.gmra.mrb[28].mxu0 %v2713_v4 }
 0x252   : > { %1055 = vmatprep.mubr.bf16.mxu0 %v2758_v2 }
 0x259   : > { %1056 = vmatmul.mubr.bf16.gmra.mrb[32].mxu0 %v2714_v5 }
 0x25a   : > { %1065 = vmatprep.mubr.bf16.mxu0 %v2758_v2 }
 0x261   : > { %1066 = vmatmul.mubr.bf16.gmra.mrb[36].mxu0 %v2715_v6 }
 0x262   : > { %1075 = vmatprep.mubr.bf16.mxu0 %v2758_v2 }
 0x269   : > { %1076 = vmatmul.mubr.bf16.gmra.mrb[40].mxu0 %v2716_v7 }
 0x26a   : > { %1085 = vmatprep.mubr.bf16.mxu0 %v2758_v2 }
 0x271   : > { %1086 = vmatmul.mubr.bf16.gmra.mrb[44].mxu0 %v2717_v8 }
 0x272   : > { %1661 = vmatprep.mubr.bf16.mxu0 %v2758_v2 }
 0x30c   : > { %v1017_v10 = vpop.f32.mrb[16].mxu0 }
 0x30d   : > { %v1018_v11 = vadd.f32 %v1017_v10, %v858_v9  ;;  %v1019_v12 = vpop.f32.mrb[17].mxu0 }
 0x30e   : > { %v1020_v14 = vadd.f32 %v1019_v12, %v858_v9  ;;  %v1021_v15 = vpop.f32.mrb[18].mxu0  ;;  %v898_v9 = vpop.permute.xlu0 %897 }
 0x30f   : > { %v1022_v16 = vadd.f32 %v1021_v15, %v863_v13  ;;  %v1023_v17 = vpop.f32.mrb[19].mxu0  ;;  %v1096_v53 = vmax.f32 %v1018_v11, 0.0 }
 0x310   : > { %v1024_v18 = vadd.f32 %v1023_v17, %v863_v13  ;;  %v1097_v21 = vmax.f32 %v1020_v14, 0.0  ;;  %v903_v14 = vpop.permute.xlu1 %902 }
 0x311   : > { %v1098_v19 = vmax.f32 %v1022_v16, 0.0 }
 0x312   : > { %v1099_v22 = vmax.f32 %v1024_v18, 0.0 }
 0x313   : > { %v1128_v23 = vpack.c.bf16 %v1098_v19, %v1096_v53 }
 0x314   : > { %v1129_v26 = vpack.c.bf16 %v1099_v22, %v1097_v21  ;;  %v1027_v27 = vpop.f32.mrb[20].mxu0 }
 0x315   : > { %v1028_v28 = vadd.f32 %v1027_v27, %v868_v24  ;;  %v1029_v29 = vpop.f32.mrb[21].mxu0 }
 0x316   : > { %v1030_v30 = vadd.f32 %v1029_v29, %v868_v24  ;;  %v1031_v31 = vpop.f32.mrb[22].mxu0  ;;  %1306 = vmatprep.subr.bf16.mxu1 %v1129_v26  ;;  %v908_v26 = vpop.permute.xlu0 %907 }
 0x317   : > { %v1032_v32 = vadd.f32 %v1031_v31, %v873_v52  ;;  %v1033_v33 = vpop.f32.mrb[23].mxu0  ;;  %1307 = vmatpush1.bf16.msra.mxu1 %v1128_v23  ;;  %v1100_v35 = vmax.f32 %v1028_v28, 0.0 }
 0x318   : > { %v1034_v34 = vadd.f32 %v1033_v33, %v873_v52  ;;  %v1101_v37 = vmax.f32 %v1030_v30, 0.0  ;;  %v913_v30 = vpop.permute.xlu1 %912 }
 0x319   : > { %v1102_v36 = vmax.f32 %v1032_v32, 0.0 }
 0x31a   : > { %v1103_v38 = vmax.f32 %v1034_v34, 0.0 }
 0x31b   : > { %v1130_v39 = vpack.c.bf16 %v1102_v36, %v1100_v35 }
 0x31c   : > { %v1131_v41 = vpack.c.bf16 %v1103_v38, %v1101_v37  ;;  %v1037_v42 = vpop.f32.mrb[24].mxu0 }
 0x31d   : > { %v1038_v43 = vadd.f32 %v1037_v42, %v878_v40  ;;  %v1039_v44 = vpop.f32.mrb[25].mxu0 }
 0x31e   : > { %v1040_v46 = vadd.f32 %v1039_v44, %v878_v40  ;;  %v1041_v47 = vpop.f32.mrb[26].mxu0  ;;  %1308 = vmatprep.subr.bf16.mxu1 %v1131_v41  ;;  %v918_v41 = vpop.permute.xlu0 %917 }
 0x31f   : > { %v1042_v55 = vadd.f32 %v1041_v47, %v883_v45  ;;  %v1043_v48 = vpop.f32.mrb[27].mxu0  ;;  %1309 = vmatpush1.bf16.msra.mxu1 %v1130_v39  ;;  %v1104_v51 = vmax.f32 %v1038_v43, 0.0 }
 0x320   : > { %v1044_v49 = vadd.f32 %v1043_v48, %v883_v45  ;;  %v1105_v58 = vmax.f32 %v1040_v46, 0.0  ;;  %v923_v46 = vpop.permute.xlu1 %922 }
 0x321   : > { %v1106_v57 = vmax.f32 %v1042_v55, 0.0 }
 0x322   : > { %v1107_v54 = vmax.f32 %v1044_v49, 0.0 }
 0x323   : > { %v1132_v25 = vpack.c.bf16 %v1106_v57, %v1104_v51 }
 0x324   : > { %v1133_v56 = vpack.c.bf16 %v1107_v54, %v1105_v58  ;;  %v1047_v59 = vpop.f32.mrb[28].mxu0 }
 0x325   : > { %v1048_v60 = vadd.f32 %v1047_v59, %v888_v20  ;;  %v1049_v61 = vpop.f32.mrb[29].mxu0 }
 0x326   : > { %v1050_v62 = vadd.f32 %v1049_v61, %v888_v20  ;;  %v1051_v63 = vpop.f32.mrb[30].mxu0  ;;  %1310 = vmatprep.subr.bf16.mxu1 %v1133_v56  ;;  %v928_v56 = vpop.permute.xlu0 %927 }
 0x327   : > { %v1052_v0 = vadd.f32 %v1051_v63, %v893_v50  ;;  %v1053_v1 = vpop.f32.mrb[31].mxu0  ;;  %1311 = vmatpush1.bf16.msra.mxu1 %v1132_v25  ;;  %v1108_v4 = vmax.f32 %v1048_v60, 0.0 }
 0x328   : > { %v1054_v3 = vadd.f32 %v1053_v1, %v893_v50  ;;  %v1109_v6 = vmax.f32 %v1050_v62, 0.0  ;;  %v933_v62 = vpop.permute.xlu1 %932 }
 0x329   : > { %v1110_v5 = vmax.f32 %v1052_v0, 0.0 }
 0x32a   : > { %v1111_v7 = vmax.f32 %v1054_v3, 0.0 }
 0x32b   : > { %v1134_v8 = vpack.c.bf16 %v1110_v5, %v1108_v4 }
 0x32c   : > { %v1135_v10 = vpack.c.bf16 %v1111_v7, %v1109_v6  ;;  %v1057_v11 = vpop.f32.mrb[32].mxu0 }
 0x32d   : > { %v1058_v12 = vadd.f32 %v1057_v11, %v898_v9  ;;  %v1059_v13 = vpop.f32.mrb[33].mxu0  ;;  %v2718_v11 = vld [vmem:[%s3349_s1 + $0xc0] sm:$0xff]  }
 0x32e   : > { %v1060_v15 = vadd.f32 %v1059_v13, %v898_v9  ;;  %v1061_v16 = vpop.f32.mrb[34].mxu0  ;;  %1312 = vmatprep.subr.bf16.mxu1 %v1135_v10  ;;  %v2720_v13 = vld [vmem:[%s3349_s1 + $0xd0] sm:$0xff]  }
 0x32f   : > { %v1062_v17 = vadd.f32 %v1061_v16, %v903_v14  ;;  %v1063_v18 = vpop.f32.mrb[35].mxu0  ;;  %1313 = vmatpush1.bf16.msra.mxu1 %v1134_v8  ;;  %v1112_v19 = vmax.f32 %v1058_v12, 0.0  ;;  %v2719_v12 = vld [vmem:[%s3349_s1 + $0xc8] sm:$0xff]  }
 0x330   : > { %v1064_v53 = vadd.f32 %v1063_v18, %v903_v14  ;;  %v1113_v22 = vmax.f32 %v1060_v15, 0.0  ;;  %v2721_v14 = vld [vmem:[%s3349_s1 + $0xd8] sm:$0xff]   ;;  %v2722_v15 = vld [vmem:[%s3349_s1 + $0xe0] sm:$0xff]   ;;  %v2723_v16 = vld [vmem:[%s3349_s1 + $0xe8] sm:$0xff]  }
 0x331   : > { %v1114_v21 = vmax.f32 %v1062_v17, 0.0  ;;  %v2724_v17 = vld [vmem:[%s3349_s1 + $0xf0] sm:$0xff]   ;;  %v2725_v18 = vld [vmem:[%s3349_s1 + $0xf8] sm:$0xff]  }
 0x332   : > { %v1115_v23 = vmax.f32 %v1064_v53, 0.0  ;;  %v1181_v53 = vpop.permute.xlu0 %1180 }
 0x333   : > { %v1136_v24 = vpack.c.bf16 %v1114_v21, %v1112_v19 }
 0x334   : > { %v1137_v27 = vpack.c.bf16 %v1115_v23, %v1113_v22  ;;  %v1067_v28 = vpop.f32.mrb[36].mxu0  ;;  %v1186_v23 = vpop.permute.xlu1 %1185 }
 0x335   : > { %v1068_v29 = vadd.f32 %v1067_v28, %v908_v26  ;;  %v1069_v52 = vpop.f32.mrb[37].mxu0 }
 0x336   : > { %v1070_v31 = vadd.f32 %v1069_v52, %v908_v26  ;;  %v1071_v32 = vpop.f32.mrb[38].mxu0  ;;  %1314 = vmatprep.subr.bf16.mxu1 %v1137_v27 }
 0x337   : > { %v1072_v33 = vadd.f32 %v1071_v32, %v913_v30  ;;  %v1073_v34 = vpop.f32.mrb[39].mxu0  ;;  %1315 = vmatpush1.bf16.msra.mxu1 %v1136_v24  ;;  %v1116_v36 = vmax.f32 %v1068_v29, 0.0 }
 0x338   : > { %v1074_v35 = vadd.f32 %v1073_v34, %v913_v30  ;;  %v1117_v38 = vmax.f32 %v1070_v31, 0.0  ;;  %v1191_v34 = vpop.permute.xlu0 %1190 }
 0x339   : > { %v1118_v37 = vmax.f32 %v1072_v33, 0.0 }
 0x33a   : > { %v1119_v39 = vmax.f32 %v1074_v35, 0.0 }
 0x33b   : > { %v1138_v40 = vpack.c.bf16 %v1118_v37, %v1116_v36 }
 0x33c   : > { %v1139_v42 = vpack.c.bf16 %v1119_v39, %v1117_v38  ;;  %v1077_v43 = vpop.f32.mrb[40].mxu0  ;;  %v1196_v39 = vpop.permute.xlu1 %1195 }
 0x33d   : > { %v1078_v44 = vadd.f32 %v1077_v43, %v918_v41  ;;  %v1079_v45 = vpop.f32.mrb[41].mxu0 }
 0x33e   : > { %v1080_v47 = vadd.f32 %v1079_v45, %v918_v41  ;;  %v1081_v55 = vpop.f32.mrb[42].mxu0  ;;  %1316 = vmatprep.subr.bf16.mxu1 %v1139_v42 }
 0x33f   : > { %v1082_v48 = vadd.f32 %v1081_v55, %v923_v46  ;;  %v1083_v49 = vpop.f32.mrb[43].mxu0  ;;  %1317 = vmatpush1.bf16.msra.mxu1 %v1138_v40  ;;  %v1120_v57 = vmax.f32 %v1078_v44, 0.0 }
 0x340   : > { %v1084_v51 = vadd.f32 %v1083_v49, %v923_v46  ;;  %v1121_v54 = vmax.f32 %v1080_v47, 0.0  ;;  %v1201_v49 = vpop.permute.xlu0 %1200 }
 0x341   : > { %v1122_v58 = vmax.f32 %v1082_v48, 0.0 }
 0x342   : > { %v1123_v25 = vmax.f32 %v1084_v51, 0.0 }
 0x343   : > { %v1140_v20 = vpack.c.bf16 %v1122_v58, %v1120_v57 }
 0x344   : > { %v1141_v59 = vpack.c.bf16 %v1123_v25, %v1121_v54  ;;  %v1087_v60 = vpop.f32.mrb[44].mxu0  ;;  %v1206_v25 = vpop.permute.xlu1 %1205 }
 0x345   : > { %v1088_v61 = vadd.f32 %v1087_v60, %v928_v56  ;;  %v1089_v50 = vpop.f32.mrb[45].mxu0 }
 0x346   : > { %v1090_v63 = vadd.f32 %v1089_v50, %v928_v56  ;;  %v1091_v0 = vpop.f32.mrb[46].mxu0  ;;  %1318 = vmatprep.subr.bf16.mxu1 %v1141_v59 }
 0x347   : > { %v1092_v1 = vadd.f32 %v1091_v0, %v933_v62  ;;  %v1093_v3 = vpop.f32.mrb[47].mxu0  ;;  %1319 = vmatpush1.bf16.msra.mxu1 %v1140_v20  ;;  %v1124_v5 = vmax.f32 %v1088_v61, 0.0 }
 0x348   : > { %v1094_v4 = vadd.f32 %v1093_v3, %v933_v62  ;;  %v1125_v7 = vmax.f32 %v1090_v63, 0.0  ;;  %v1211_v3 = vpop.permute.xlu0 %1210 }
 0x349   : > { %v1126_v6 = vmax.f32 %v1092_v1, 0.0 }
 0x34a   : > { %v1127_v8 = vmax.f32 %v1094_v4, 0.0 }
 0x34b   : > { %v1142_v9 = vpack.c.bf16 %v1126_v6, %v1124_v5 }
 0x34c   : > { %v1143_v10 = vpack.c.bf16 %v1127_v8, %v1125_v7  ;;  %v1216_v8 = vpop.permute.xlu1 %1215 }
 0x34e   : > { %1320 = vmatprep.subr.bf16.mxu1 %v1143_v10 }
 0x34f   : > { %1321 = vmatpush1.bf16.msra.mxu1 %v1142_v9 }
 0x352   : > { %1339 = vmatmul.mubr.bf16.vlgmr.msra.gmra.mrb[48].mxu1 %v2718_v11 }
 0x353   : > { %1348 = vmatprep.mubr.bf16.mxu1 %v2758_v2 }
 0x35a   : > { %1349 = vmatmul.mubr.bf16.gmra.mrb[52].mxu1 %v2719_v12 }
 0x35b   : > { %1358 = vmatprep.mubr.bf16.mxu1 %v2758_v2 }
 0x362   : > { %1359 = vmatmul.mubr.bf16.gmra.mrb[56].mxu1 %v2720_v13 }
 0x363   : > { %1368 = vmatprep.mubr.bf16.mxu1 %v2758_v2 }
 0x36a   : > { %1369 = vmatmul.mubr.bf16.gmra.mrb[60].mxu1 %v2721_v14 }
 0x36b   : > { %1378 = vmatprep.mubr.bf16.mxu1 %v2758_v2 }
 0x372   : > { %1379 = vmatmul.mubr.bf16.gmra.mrb[64].mxu1 %v2722_v15 }
 0x373   : > { %1388 = vmatprep.mubr.bf16.mxu1 %v2758_v2 }
 0x37a   : > { %1389 = vmatmul.mubr.bf16.gmra.mrb[68].mxu1 %v2723_v16 }
 0x37b   : > { %1398 = vmatprep.mubr.bf16.mxu1 %v2758_v2 }
 0x382   : > { %1399 = vmatmul.mubr.bf16.gmra.mrb[72].mxu1 %v2724_v17 }
 0x383   : > { %1408 = vmatprep.mubr.bf16.mxu1 %v2758_v2 }
 0x38a   : > { %1409 = vmatmul.mubr.bf16.gmra.mrb[76].mxu1 %v2725_v18 }
 0x38b   : > { %1984 = vmatprep.mubr.bf16.mxu1 %v2758_v2 }
 0x425   : > { %v1340_v19 = vpop.f32.mrb[48].mxu1 }
 0x426   : > { %v1341_v21 = vadd.f32 %v1340_v19, %v1181_v53  ;;  %v1342_v22 = vpop.f32.mrb[49].mxu1 }
 0x427   : > { %v1343_v24 = vadd.f32 %v1342_v22, %v1181_v53  ;;  %v1344_v26 = vpop.f32.mrb[50].mxu1  ;;  %v1221_v53 = vpop.permute.xlu0 %1220 }
 0x428   : > { %v1345_v27 = vadd.f32 %v1344_v26, %v1186_v23  ;;  %v1346_v28 = vpop.f32.mrb[51].mxu1  ;;  %v1419_v52 = vmax.f32 %v1341_v21, 0.0 }
 0x429   : > { %v1347_v29 = vadd.f32 %v1346_v28, %v1186_v23  ;;  %v1420_v31 = vmax.f32 %v1343_v24, 0.0  ;;  %v1226_v24 = vpop.permute.xlu1 %1225 }
 0x42a   : > { %v1421_v30 = vmax.f32 %v1345_v27, 0.0 }
 0x42b   : > { %v1422_v32 = vmax.f32 %v1347_v29, 0.0 }
 0x42c   : > { %v1451_v33 = vpack.c.bf16 %v1421_v30, %v1419_v52 }
 0x42d   : > { %v1452_v35 = vpack.c.bf16 %v1422_v32, %v1420_v31  ;;  %v1350_v36 = vpop.f32.mrb[52].mxu1 }
 0x42e   : > { %v1351_v37 = vadd.f32 %v1350_v36, %v1191_v34  ;;  %v1352_v38 = vpop.f32.mrb[53].mxu1 }
 0x42f   : > { %v1353_v40 = vadd.f32 %v1352_v38, %v1191_v34  ;;  %v1354_v41 = vpop.f32.mrb[54].mxu1  ;;  %1629 = vmatprep.subr.bf16.mxu0 %v1452_v35  ;;  %v1231_v35 = vpop.permute.xlu0 %1230 }
 0x430   : > { %v1355_v42 = vadd.f32 %v1354_v41, %v1196_v39  ;;  %v1356_v43 = vpop.f32.mrb[55].mxu1  ;;  %1630 = vmatpush1.bf16.msra.mxu0 %v1451_v33  ;;  %v1423_v45 = vmax.f32 %v1351_v37, 0.0 }
 0x431   : > { %v1357_v44 = vadd.f32 %v1356_v43, %v1196_v39  ;;  %v1424_v47 = vmax.f32 %v1353_v40, 0.0  ;;  %v1236_v40 = vpop.permute.xlu1 %1235 }
 0x432   : > { %v1425_v46 = vmax.f32 %v1355_v42, 0.0 }
 0x433   : > { %v1426_v55 = vmax.f32 %v1357_v44, 0.0 }
 0x434   : > { %v1453_v48 = vpack.c.bf16 %v1425_v46, %v1423_v45 }
 0x435   : > { %v1454_v51 = vpack.c.bf16 %v1426_v55, %v1424_v47  ;;  %v1360_v57 = vpop.f32.mrb[56].mxu1 }
 0x436   : > { %v1361_v58 = vadd.f32 %v1360_v57, %v1201_v49  ;;  %v1362_v54 = vpop.f32.mrb[57].mxu1 }
 0x437   : > { %v1363_v20 = vadd.f32 %v1362_v54, %v1201_v49  ;;  %v1364_v56 = vpop.f32.mrb[58].mxu1  ;;  %1631 = vmatprep.subr.bf16.mxu0 %v1454_v51  ;;  %v1241_v51 = vpop.permute.xlu0 %1240 }
 0x438   : > { %v1365_v59 = vadd.f32 %v1364_v56, %v1206_v25  ;;  %v1366_v60 = vpop.f32.mrb[59].mxu1  ;;  %1632 = vmatpush1.bf16.msra.mxu0 %v1453_v48  ;;  %v1427_v50 = vmax.f32 %v1361_v58, 0.0 }
 0x439   : > { %v1367_v61 = vadd.f32 %v1366_v60, %v1206_v25  ;;  %v1428_v63 = vmax.f32 %v1363_v20, 0.0  ;;  %v1246_v20 = vpop.permute.xlu1 %1245 }
 0x43a   : > { %v1429_v62 = vmax.f32 %v1365_v59, 0.0 }
 0x43b   : > { %v1430_v0 = vmax.f32 %v1367_v61, 0.0 }
 0x43c   : > { %v1455_v1 = vpack.c.bf16 %v1429_v62, %v1427_v50 }
 0x43d   : > { %v1456_v4 = vpack.c.bf16 %v1430_v0, %v1428_v63  ;;  %v1370_v5 = vpop.f32.mrb[60].mxu1 }
 0x43e   : > { %v1371_v6 = vadd.f32 %v1370_v5, %v1211_v3  ;;  %v1372_v7 = vpop.f32.mrb[61].mxu1 }
 0x43f   : > { %v1373_v9 = vadd.f32 %v1372_v7, %v1211_v3  ;;  %v1374_v10 = vpop.f32.mrb[62].mxu1  ;;  %1633 = vmatprep.subr.bf16.mxu0 %v1456_v4  ;;  %v1251_v4 = vpop.permute.xlu0 %1250 }
 0x440   : > { %v1375_v11 = vadd.f32 %v1374_v10, %v1216_v8  ;;  %v1376_v12 = vpop.f32.mrb[63].mxu1  ;;  %1634 = vmatpush1.bf16.msra.mxu0 %v1455_v1  ;;  %v1431_v14 = vmax.f32 %v1371_v6, 0.0 }
 0x441   : > { %v1377_v13 = vadd.f32 %v1376_v12, %v1216_v8  ;;  %v1432_v16 = vmax.f32 %v1373_v9, 0.0  ;;  %v1256_v9 = vpop.permute.xlu1 %1255 }
 0x442   : > { %v1433_v15 = vmax.f32 %v1375_v11, 0.0 }
 0x443   : > { %v1434_v17 = vmax.f32 %v1377_v13, 0.0 }
 0x444   : > { %v1457_v18 = vpack.c.bf16 %v1433_v15, %v1431_v14 }
 0x445   : > { %v1458_v19 = vpack.c.bf16 %v1434_v17, %v1432_v16  ;;  %v1380_v21 = vpop.f32.mrb[64].mxu1 }
 0x446   : > { %v1381_v22 = vadd.f32 %v1380_v21, %v1221_v53  ;;  %v1382_v23 = vpop.f32.mrb[65].mxu1  ;;  %v2726_v21 = vld [vmem:[%s3349_s1 + $0x100] sm:$0xff]  }
 0x447   : > { %v1383_v26 = vadd.f32 %v1382_v23, %v1221_v53  ;;  %v1384_v27 = vpop.f32.mrb[66].mxu1  ;;  %1635 = vmatprep.subr.bf16.mxu0 %v1458_v19  ;;  %v2728_v23 = vld [vmem:[%s3349_s1 + $0x110] sm:$0xff]  }
 0x448   : > { %v1385_v28 = vadd.f32 %v1384_v27, %v1226_v24  ;;  %v1386_v29 = vpop.f32.mrb[67].mxu1  ;;  %1636 = vmatpush1.bf16.msra.mxu0 %v1457_v18  ;;  %v1435_v30 = vmax.f32 %v1381_v22, 0.0  ;;  %v2727_v22 = vld [vmem:[%s3349_s1 + $0x108] sm:$0xff]  }
 0x449   : > { %v1387_v52 = vadd.f32 %v1386_v29, %v1226_v24  ;;  %v1436_v32 = vmax.f32 %v1383_v26, 0.0  ;;  %v2729_v24 = vld [vmem:[%s3349_s1 + $0x118] sm:$0xff]   ;;  %v2730_v26 = vld [vmem:[%s3349_s1 + $0x120] sm:$0xff]   ;;  %v2731_v27 = vld [vmem:[%s3349_s1 + $0x128] sm:$0xff]  }
 0x44a   : > { %v1437_v31 = vmax.f32 %v1385_v28, 0.0  ;;  %v2732_v28 = vld [vmem:[%s3349_s1 + $0x130] sm:$0xff]   ;;  %v2733_v29 = vld [vmem:[%s3349_s1 + $0x138] sm:$0xff]  }
 0x44b   : > { %v1438_v33 = vmax.f32 %v1387_v52, 0.0  ;;  %v1504_v52 = vpop.permute.xlu0 %1503 }
 0x44c   : > { %v1459_v34 = vpack.c.bf16 %v1437_v31, %v1435_v30 }
 0x44d   : > { %v1460_v36 = vpack.c.bf16 %v1438_v33, %v1436_v32  ;;  %v1390_v37 = vpop.f32.mrb[68].mxu1  ;;  %v1509_v33 = vpop.permute.xlu1 %1508 }
 0x44e   : > { %v1391_v38 = vadd.f32 %v1390_v37, %v1231_v35  ;;  %v1392_v39 = vpop.f32.mrb[69].mxu1 }
 0x44f   : > { %v1393_v41 = vadd.f32 %v1392_v39, %v1231_v35  ;;  %v1394_v42 = vpop.f32.mrb[70].mxu1  ;;  %1637 = vmatprep.subr.bf16.mxu0 %v1460_v36 }
 0x450   : > { %v1395_v43 = vadd.f32 %v1394_v42, %v1236_v40  ;;  %v1396_v44 = vpop.f32.mrb[71].mxu1  ;;  %1638 = vmatpush1.bf16.msra.mxu0 %v1459_v34  ;;  %v1439_v46 = vmax.f32 %v1391_v38, 0.0 }
 0x451   : > { %v1397_v45 = vadd.f32 %v1396_v44, %v1236_v40  ;;  %v1440_v55 = vmax.f32 %v1393_v41, 0.0  ;;  %v1514_v44 = vpop.permute.xlu0 %1513 }
 0x452   : > { %v1441_v47 = vmax.f32 %v1395_v43, 0.0 }
 0x453   : > { %v1442_v48 = vmax.f32 %v1397_v45, 0.0 }
 0x454   : > { %v1461_v49 = vpack.c.bf16 %v1441_v47, %v1439_v46 }
 0x455   : > { %v1462_v57 = vpack.c.bf16 %v1442_v48, %v1440_v55  ;;  %v1400_v58 = vpop.f32.mrb[72].mxu1  ;;  %v1519_v48 = vpop.permute.xlu1 %1518 }
 0x456   : > { %v1401_v54 = vadd.f32 %v1400_v58, %v1241_v51  ;;  %v1402_v25 = vpop.f32.mrb[73].mxu1 }
 0x457   : > { %v1403_v56 = vadd.f32 %v1402_v25, %v1241_v51  ;;  %v1404_v59 = vpop.f32.mrb[74].mxu1  ;;  %1639 = vmatprep.subr.bf16.mxu0 %v1462_v57 }
 0x458   : > { %v1405_v60 = vadd.f32 %v1404_v59, %v1246_v20  ;;  %v1406_v61 = vpop.f32.mrb[75].mxu1  ;;  %1640 = vmatpush1.bf16.msra.mxu0 %v1461_v49  ;;  %v1443_v62 = vmax.f32 %v1401_v54, 0.0 }
 0x459   : > { %v1407_v50 = vadd.f32 %v1406_v61, %v1246_v20  ;;  %v1444_v0 = vmax.f32 %v1403_v56, 0.0  ;;  %v1524_v61 = vpop.permute.xlu0 %1523 }
 0x45a   : > { %v1445_v63 = vmax.f32 %v1405_v60, 0.0 }
 0x45b   : > { %v1446_v1 = vmax.f32 %v1407_v50, 0.0 }
 0x45c   : > { %v1463_v3 = vpack.c.bf16 %v1445_v63, %v1443_v62 }
 0x45d   : > { %v1464_v5 = vpack.c.bf16 %v1446_v1, %v1444_v0  ;;  %v1410_v6 = vpop.f32.mrb[76].mxu1  ;;  %v1529_v1 = vpop.permute.xlu1 %1528 }
 0x45e   : > { %v1411_v7 = vadd.f32 %v1410_v6, %v1251_v4  ;;  %v1412_v8 = vpop.f32.mrb[77].mxu1 }
 0x45f   : > { %v1413_v10 = vadd.f32 %v1412_v8, %v1251_v4  ;;  %v1414_v11 = vpop.f32.mrb[78].mxu1  ;;  %1641 = vmatprep.subr.bf16.mxu0 %v1464_v5 }
 0x460   : > { %v1415_v12 = vadd.f32 %v1414_v11, %v1256_v9  ;;  %v1416_v13 = vpop.f32.mrb[79].mxu1  ;;  %1642 = vmatpush1.bf16.msra.mxu0 %v1463_v3  ;;  %v1447_v15 = vmax.f32 %v1411_v7, 0.0 }
 0x461   : > { %v1417_v14 = vadd.f32 %v1416_v13, %v1256_v9  ;;  %v1448_v17 = vmax.f32 %v1413_v10, 0.0  ;;  %v1534_v13 = vpop.permute.xlu0 %1533 }
 0x462   : > { %v1449_v16 = vmax.f32 %v1415_v12, 0.0 }
 0x463   : > { %v1450_v18 = vmax.f32 %v1417_v14, 0.0 }
 0x464   : > { %v1465_v53 = vpack.c.bf16 %v1449_v16, %v1447_v15 }
 0x465   : > { %v1466_v19 = vpack.c.bf16 %v1450_v18, %v1448_v17  ;;  %v1539_v18 = vpop.permute.xlu1 %1538 }
 0x467   : > { %1643 = vmatprep.subr.bf16.mxu0 %v1466_v19 }
 0x468   : > { %1644 = vmatpush1.bf16.msra.mxu0 %v1465_v53 }
 0x46b   : > { %1662 = vmatmul.mubr.bf16.vlgmr.msra.gmra.mrb[48].mxu0 %v2726_v21 }
 0x46c   : > { %1671 = vmatprep.mubr.bf16.mxu0 %v2758_v2 }
 0x473   : > { %1672 = vmatmul.mubr.bf16.gmra.mrb[52].mxu0 %v2727_v22 }
 0x474   : > { %1681 = vmatprep.mubr.bf16.mxu0 %v2758_v2 }
 0x47b   : > { %1682 = vmatmul.mubr.bf16.gmra.mrb[56].mxu0 %v2728_v23 }
 0x47c   : > { %1691 = vmatprep.mubr.bf16.mxu0 %v2758_v2 }
 0x483   : > { %1692 = vmatmul.mubr.bf16.gmra.mrb[60].mxu0 %v2729_v24 }
 0x484   : > { %1701 = vmatprep.mubr.bf16.mxu0 %v2758_v2 }
 0x48b   : > { %1702 = vmatmul.mubr.bf16.gmra.mrb[64].mxu0 %v2730_v26 }
 0x48c   : > { %1711 = vmatprep.mubr.bf16.mxu0 %v2758_v2 }
 0x493   : > { %1712 = vmatmul.mubr.bf16.gmra.mrb[68].mxu0 %v2731_v27 }
 0x494   : > { %1721 = vmatprep.mubr.bf16.mxu0 %v2758_v2 }
 0x49b   : > { %1722 = vmatmul.mubr.bf16.gmra.mrb[72].mxu0 %v2732_v28 }
 0x49c   : > { %1731 = vmatprep.mubr.bf16.mxu0 %v2758_v2 }
 0x4a3   : > { %1732 = vmatmul.mubr.bf16.gmra.mrb[76].mxu0 %v2733_v29 }
 0x4a4   : > { %2292 = vmatprep.mubr.bf16.mxu0 %v2758_v2 }
 0x53e   : > { %v1663_v30 = vpop.f32.mrb[48].mxu0 }
 0x53f   : > { %v1664_v31 = vadd.f32 %v1663_v30, %v1504_v52  ;;  %v1665_v32 = vpop.f32.mrb[49].mxu0 }
 0x540   : > { %v1666_v34 = vadd.f32 %v1665_v32, %v1504_v52  ;;  %v1667_v35 = vpop.f32.mrb[50].mxu0  ;;  %v1544_v52 = vpop.permute.xlu0 %1543 }
 0x541   : > { %v1668_v36 = vadd.f32 %v1667_v35, %v1509_v33  ;;  %v1669_v37 = vpop.f32.mrb[51].mxu0  ;;  %v1742_v39 = vmax.f32 %v1664_v31, 0.0 }
 0x542   : > { %v1670_v38 = vadd.f32 %v1669_v37, %v1509_v33  ;;  %v1743_v41 = vmax.f32 %v1666_v34, 0.0  ;;  %v1549_v34 = vpop.permute.xlu1 %1548 }
 0x543   : > { %v1744_v40 = vmax.f32 %v1668_v36, 0.0 }
 0x544   : > { %v1745_v42 = vmax.f32 %v1670_v38, 0.0 }
 0x545   : > { %v1774_v43 = vpack.c.bf16 %v1744_v40, %v1742_v39 }
 0x546   : > { %v1775_v45 = vpack.c.bf16 %v1745_v42, %v1743_v41  ;;  %v1673_v46 = vpop.f32.mrb[52].mxu0 }
 0x547   : > { %v1674_v47 = vadd.f32 %v1673_v46, %v1514_v44  ;;  %v1675_v55 = vpop.f32.mrb[53].mxu0 }
 0x548   : > { %v1676_v49 = vadd.f32 %v1675_v55, %v1514_v44  ;;  %v1677_v51 = vpop.f32.mrb[54].mxu0  ;;  %1952 = vmatprep.subr.bf16.mxu1 %v1775_v45  ;;  %v1554_v45 = vpop.permute.xlu0 %1553 }
 0x549   : > { %v1678_v57 = vadd.f32 %v1677_v51, %v1519_v48  ;;  %v1679_v58 = vpop.f32.mrb[55].mxu0  ;;  %1953 = vmatpush1.bf16.msra.mxu1 %v1774_v43  ;;  %v1746_v25 = vmax.f32 %v1674_v47, 0.0 }
 0x54a   : > { %v1680_v54 = vadd.f32 %v1679_v58, %v1519_v48  ;;  %v1747_v56 = vmax.f32 %v1676_v49, 0.0  ;;  %v1559_v49 = vpop.permute.xlu1 %1558 }
 0x54b   : > { %v1748_v20 = vmax.f32 %v1678_v57, 0.0 }
 0x54c   : > { %v1749_v59 = vmax.f32 %v1680_v54, 0.0 }
 0x54d   : > { %v1776_v60 = vpack.c.bf16 %v1748_v20, %v1746_v25 }
 0x54e   : > { %v1777_v50 = vpack.c.bf16 %v1749_v59, %v1747_v56  ;;  %v1683_v62 = vpop.f32.mrb[56].mxu0 }
 0x54f   : > { %v1684_v63 = vadd.f32 %v1683_v62, %v1524_v61  ;;  %v1685_v0 = vpop.f32.mrb[57].mxu0 }
 0x550   : > { %v1686_v3 = vadd.f32 %v1685_v0, %v1524_v61  ;;  %v1687_v4 = vpop.f32.mrb[58].mxu0  ;;  %1954 = vmatprep.subr.bf16.mxu1 %v1777_v50  ;;  %v1564_v50 = vpop.permute.xlu0 %1563 }
 0x551   : > { %v1688_v5 = vadd.f32 %v1687_v4, %v1529_v1  ;;  %v1689_v6 = vpop.f32.mrb[59].mxu0  ;;  %1955 = vmatpush1.bf16.msra.mxu1 %v1776_v60  ;;  %v1750_v8 = vmax.f32 %v1684_v63, 0.0 }
 0x552   : > { %v1690_v7 = vadd.f32 %v1689_v6, %v1529_v1  ;;  %v1751_v10 = vmax.f32 %v1686_v3, 0.0  ;;  %v1569_v3 = vpop.permute.xlu1 %1568 }
 0x553   : > { %v1752_v9 = vmax.f32 %v1688_v5, 0.0 }
 0x554   : > { %v1753_v11 = vmax.f32 %v1690_v7, 0.0 }
 0x555   : > { %v1778_v12 = vpack.c.bf16 %v1752_v9, %v1750_v8 }
 0x556   : > { %v1779_v14 = vpack.c.bf16 %v1753_v11, %v1751_v10  ;;  %v1693_v15 = vpop.f32.mrb[60].mxu0 }
 0x557   : > { %v1694_v16 = vadd.f32 %v1693_v15, %v1534_v13  ;;  %v1695_v17 = vpop.f32.mrb[61].mxu0 }
 0x558   : > { %v1696_v53 = vadd.f32 %v1695_v17, %v1534_v13  ;;  %v1697_v19 = vpop.f32.mrb[62].mxu0  ;;  %1956 = vmatprep.subr.bf16.mxu1 %v1779_v14  ;;  %v1574_v14 = vpop.permute.xlu0 %1573 }
 0x559   : > { %v1698_v21 = vadd.f32 %v1697_v19, %v1539_v18  ;;  %v1699_v22 = vpop.f32.mrb[63].mxu0  ;;  %1957 = vmatpush1.bf16.msra.mxu1 %v1778_v12  ;;  %v1754_v24 = vmax.f32 %v1694_v16, 0.0 }
 0x55a   : > { %v1700_v23 = vadd.f32 %v1699_v22, %v1539_v18  ;;  %v1755_v27 = vmax.f32 %v1696_v53, 0.0  ;;  %v1579_v53 = vpop.permute.xlu1 %1578 }
 0x55b   : > { %v1756_v26 = vmax.f32 %v1698_v21, 0.0 }
 0x55c   : > { %v1757_v28 = vmax.f32 %v1700_v23, 0.0 }
 0x55d   : > { %v1780_v29 = vpack.c.bf16 %v1756_v26, %v1754_v24 }
 0x55e   : > { %v1781_v30 = vpack.c.bf16 %v1757_v28, %v1755_v27  ;;  %v1703_v31 = vpop.f32.mrb[64].mxu0 }
 0x55f   : > { %v1704_v32 = vadd.f32 %v1703_v31, %v1544_v52  ;;  %v1705_v33 = vpop.f32.mrb[65].mxu0  ;;  %v2734_v31 = vld [vmem:[%s3349_s1 + $0x140] sm:$0xff]  }
 0x560   : > { %v1706_v35 = vadd.f32 %v1705_v33, %v1544_v52  ;;  %v1707_v36 = vpop.f32.mrb[66].mxu0  ;;  %1958 = vmatprep.subr.bf16.mxu1 %v1781_v30  ;;  %v2736_v33 = vld [vmem:[%s3349_s1 + $0x150] sm:$0xff]  }
 0x561   : > { %v1708_v37 = vadd.f32 %v1707_v36, %v1549_v34  ;;  %v1709_v38 = vpop.f32.mrb[67].mxu0  ;;  %1959 = vmatpush1.bf16.msra.mxu1 %v1780_v29  ;;  %v1758_v40 = vmax.f32 %v1704_v32, 0.0  ;;  %v2735_v32 = vld [vmem:[%s3349_s1 + $0x148] sm:$0xff]  }
 0x562   : > { %v1710_v39 = vadd.f32 %v1709_v38, %v1549_v34  ;;  %v1759_v42 = vmax.f32 %v1706_v35, 0.0  ;;  %v2737_v34 = vld [vmem:[%s3349_s1 + $0x158] sm:$0xff]   ;;  %v2738_v35 = vld [vmem:[%s3349_s1 + $0x160] sm:$0xff]   ;;  %v2739_v36 = vld [vmem:[%s3349_s1 + $0x168] sm:$0xff]  }
 0x563   : > { %v1760_v41 = vmax.f32 %v1708_v37, 0.0  ;;  %v2740_v37 = vld [vmem:[%s3349_s1 + $0x170] sm:$0xff]   ;;  %v2741_v38 = vld [vmem:[%s3349_s1 + $0x178] sm:$0xff]  }
 0x564   : > { %v1761_v43 = vmax.f32 %v1710_v39, 0.0  ;;  %v1827_v39 = vpop.permute.xlu0 %1826 }
 0x565   : > { %v1782_v44 = vpack.c.bf16 %v1760_v41, %v1758_v40 }
 0x566   : > { %v1783_v46 = vpack.c.bf16 %v1761_v43, %v1759_v42  ;;  %v1713_v47 = vpop.f32.mrb[68].mxu0  ;;  %v1832_v43 = vpop.permute.xlu1 %1831 }
 0x567   : > { %v1714_v55 = vadd.f32 %v1713_v47, %v1554_v45  ;;  %v1715_v48 = vpop.f32.mrb[69].mxu0 }
 0x568   : > { %v1716_v51 = vadd.f32 %v1715_v48, %v1554_v45  ;;  %v1717_v57 = vpop.f32.mrb[70].mxu0  ;;  %1960 = vmatprep.subr.bf16.mxu1 %v1783_v46 }
 0x569   : > { %v1718_v58 = vadd.f32 %v1717_v57, %v1559_v49  ;;  %v1719_v54 = vpop.f32.mrb[71].mxu0  ;;  %1961 = vmatpush1.bf16.msra.mxu1 %v1782_v44  ;;  %v1762_v20 = vmax.f32 %v1714_v55, 0.0 }
 0x56a   : > { %v1720_v25 = vadd.f32 %v1719_v54, %v1559_v49  ;;  %v1763_v59 = vmax.f32 %v1716_v51, 0.0  ;;  %v1837_v54 = vpop.permute.xlu0 %1836 }
 0x56b   : > { %v1764_v56 = vmax.f32 %v1718_v58, 0.0 }
 0x56c   : > { %v1765_v60 = vmax.f32 %v1720_v25, 0.0 }
 0x56d   : > { %v1784_v61 = vpack.c.bf16 %v1764_v56, %v1762_v20 }
 0x56e   : > { %v1785_v62 = vpack.c.bf16 %v1765_v60, %v1763_v59  ;;  %v1723_v63 = vpop.f32.mrb[72].mxu0  ;;  %v1842_v60 = vpop.permute.xlu1 %1841 }
 0x56f   : > { %v1724_v0 = vadd.f32 %v1723_v63, %v1564_v50  ;;  %v1725_v1 = vpop.f32.mrb[73].mxu0 }
 0x570   : > { %v1726_v4 = vadd.f32 %v1725_v1, %v1564_v50  ;;  %v1727_v5 = vpop.f32.mrb[74].mxu0  ;;  %1962 = vmatprep.subr.bf16.mxu1 %v1785_v62 }
 0x571   : > { %v1728_v6 = vadd.f32 %v1727_v5, %v1569_v3  ;;  %v1729_v7 = vpop.f32.mrb[75].mxu0  ;;  %1963 = vmatpush1.bf16.msra.mxu1 %v1784_v61  ;;  %v1766_v9 = vmax.f32 %v1724_v0, 0.0 }
 0x572   : > { %v1730_v8 = vadd.f32 %v1729_v7, %v1569_v3  ;;  %v1767_v11 = vmax.f32 %v1726_v4, 0.0  ;;  %v1847_v7 = vpop.permute.xlu0 %1846 }
 0x573   : > { %v1768_v10 = vmax.f32 %v1728_v6, 0.0 }
 0x574   : > { %v1769_v12 = vmax.f32 %v1730_v8, 0.0 }
 0x575   : > { %v1786_v13 = vpack.c.bf16 %v1768_v10, %v1766_v9 }
 0x576   : > { %v1787_v15 = vpack.c.bf16 %v1769_v12, %v1767_v11  ;;  %v1733_v16 = vpop.f32.mrb[76].mxu0  ;;  %v1852_v12 = vpop.permute.xlu1 %1851 }
 0x577   : > { %v1734_v17 = vadd.f32 %v1733_v16, %v1574_v14  ;;  %v1735_v18 = vpop.f32.mrb[77].mxu0 }
 0x578   : > { %v1736_v19 = vadd.f32 %v1735_v18, %v1574_v14  ;;  %v1737_v21 = vpop.f32.mrb[78].mxu0  ;;  %1964 = vmatprep.subr.bf16.mxu1 %v1787_v15 }
 0x579   : > { %v1738_v22 = vadd.f32 %v1737_v21, %v1579_v53  ;;  %v1739_v23 = vpop.f32.mrb[79].mxu0  ;;  %1965 = vmatpush1.bf16.msra.mxu1 %v1786_v13  ;;  %v1770_v26 = vmax.f32 %v1734_v17, 0.0 }
 0x57a   : > { %v1740_v24 = vadd.f32 %v1739_v23, %v1579_v53  ;;  %v1771_v28 = vmax.f32 %v1736_v19, 0.0  ;;  %v1857_v23 = vpop.permute.xlu0 %1856 }
 0x57b   : > { %v1772_v27 = vmax.f32 %v1738_v22, 0.0 }
 0x57c   : > { %v1773_v29 = vmax.f32 %v1740_v24, 0.0 }
 0x57d   : > { %v1788_v52 = vpack.c.bf16 %v1772_v27, %v1770_v26 }
 0x57e   : > { %v1789_v30 = vpack.c.bf16 %v1773_v29, %v1771_v28  ;;  %v1862_v29 = vpop.permute.xlu1 %1861 }
 0x580   : > { %1966 = vmatprep.subr.bf16.mxu1 %v1789_v30 }
 0x581   : > { %1967 = vmatpush1.bf16.msra.mxu1 %v1788_v52 }
 0x584   : > { %1985 = vmatmul.mubr.bf16.vlgmr.msra.gmra.mrb[80].mxu1 %v2734_v31 }
 0x585   : > { %1994 = vmatprep.mubr.bf16.mxu1 %v2758_v2 }
 0x58c   : > { %1995 = vmatmul.mubr.bf16.gmra.mrb[84].mxu1 %v2735_v32 }
 0x58d   : > { %2004 = vmatprep.mubr.bf16.mxu1 %v2758_v2 }
 0x594   : > { %2005 = vmatmul.mubr.bf16.gmra.mrb[88].mxu1 %v2736_v33 }
 0x595   : > { %2014 = vmatprep.mubr.bf16.mxu1 %v2758_v2 }
 0x59c   : > { %2015 = vmatmul.mubr.bf16.gmra.mrb[92].mxu1 %v2737_v34 }
 0x59d   : > { %2024 = vmatprep.mubr.bf16.mxu1 %v2758_v2 }
 0x5a4   : > { %2025 = vmatmul.mubr.bf16.gmra.mrb[96].mxu1 %v2738_v35 }
 0x5a5   : > { %2034 = vmatprep.mubr.bf16.mxu1 %v2758_v2 }
 0x5ac   : > { %2035 = vmatmul.mubr.bf16.gmra.mrb[100].mxu1 %v2739_v36 }
 0x5ad   : > { %2044 = vmatprep.mubr.bf16.mxu1 %v2758_v2 }
 0x5b4   : > { %2045 = vmatmul.mubr.bf16.gmra.mrb[104].mxu1 %v2740_v37 }
 0x5b5   : > { %2054 = vmatprep.mubr.bf16.mxu1 %v2758_v2 }
 0x5bc   : > { %2055 = vmatmul.mubr.bf16.gmra.mrb[108].mxu1 %v2741_v38 }
 0x657   : > { %v1986_v40 = vpop.f32.mrb[80].mxu1 }
 0x658   : > { %v1987_v41 = vadd.f32 %v1986_v40, %v1827_v39  ;;  %v1988_v42 = vpop.f32.mrb[81].mxu1 }
 0x659   : > { %v1989_v44 = vadd.f32 %v1988_v42, %v1827_v39  ;;  %v1990_v45 = vpop.f32.mrb[82].mxu1  ;;  %v1867_v39 = vpop.permute.xlu0 %1866 }
 0x65a   : > { %v1991_v46 = vadd.f32 %v1990_v45, %v1832_v43  ;;  %v1992_v47 = vpop.f32.mrb[83].mxu1  ;;  %v2065_v48 = vmax.f32 %v1987_v41, 0.0 }
 0x65b   : > { %v1993_v55 = vadd.f32 %v1992_v47, %v1832_v43  ;;  %v2066_v51 = vmax.f32 %v1989_v44, 0.0  ;;  %v1872_v44 = vpop.permute.xlu1 %1871 }
 0x65c   : > { %v2067_v49 = vmax.f32 %v1991_v46, 0.0 }
 0x65d   : > { %v2068_v57 = vmax.f32 %v1993_v55, 0.0 }
 0x65e   : > { %v2097_v58 = vpack.c.bf16 %v2067_v49, %v2065_v48 }
 0x65f   : > { %v2098_v25 = vpack.c.bf16 %v2068_v57, %v2066_v51  ;;  %v1996_v20 = vpop.f32.mrb[84].mxu1 }
 0x660   : > { %v1997_v56 = vadd.f32 %v1996_v20, %v1837_v54  ;;  %v1998_v59 = vpop.f32.mrb[85].mxu1 }
 0x661   : > { %v1999_v61 = vadd.f32 %v1998_v59, %v1837_v54  ;;  %v2000_v50 = vpop.f32.mrb[86].mxu1  ;;  %2260 = vmatprep.subr.bf16.mxu0 %v2098_v25  ;;  %v1877_v25 = vpop.permute.xlu0 %1876 }
 0x662   : > { %v2001_v62 = vadd.f32 %v2000_v50, %v1842_v60  ;;  %v2002_v63 = vpop.f32.mrb[87].mxu1  ;;  %2261 = vmatpush1.bf16.msra.mxu0 %v2097_v58  ;;  %v2069_v1 = vmax.f32 %v1997_v56, 0.0 }
 0x663   : > { %v2003_v0 = vadd.f32 %v2002_v63, %v1842_v60  ;;  %v2070_v4 = vmax.f32 %v1999_v61, 0.0  ;;  %v1882_v61 = vpop.permute.xlu1 %1881 }
 0x664   : > { %v2071_v3 = vmax.f32 %v2001_v62, 0.0 }
 0x665   : > { %v2072_v5 = vmax.f32 %v2003_v0, 0.0 }
 0x666   : > { %v2099_v6 = vpack.c.bf16 %v2071_v3, %v2069_v1 }
 0x667   : > { %v2100_v8 = vpack.c.bf16 %v2072_v5, %v2070_v4  ;;  %v2006_v9 = vpop.f32.mrb[88].mxu1 }
 0x668   : > { %v2007_v10 = vadd.f32 %v2006_v9, %v1847_v7  ;;  %v2008_v11 = vpop.f32.mrb[89].mxu1 }
 0x669   : > { %v2009_v13 = vadd.f32 %v2008_v11, %v1847_v7  ;;  %v2010_v14 = vpop.f32.mrb[90].mxu1  ;;  %2262 = vmatprep.subr.bf16.mxu0 %v2100_v8  ;;  %v1887_v8 = vpop.permute.xlu0 %1886 }
 0x66a   : > { %v2011_v15 = vadd.f32 %v2010_v14, %v1852_v12  ;;  %v2012_v16 = vpop.f32.mrb[91].mxu1  ;;  %2263 = vmatpush1.bf16.msra.mxu0 %v2099_v6  ;;  %v2073_v18 = vmax.f32 %v2007_v10, 0.0 }
 0x66b   : > { %v2013_v17 = vadd.f32 %v2012_v16, %v1852_v12  ;;  %v2074_v19 = vmax.f32 %v2009_v13, 0.0  ;;  %v1892_v13 = vpop.permute.xlu1 %1891 }
 0x66c   : > { %v2075_v53 = vmax.f32 %v2011_v15, 0.0 }
 0x66d   : > { %v2076_v21 = vmax.f32 %v2013_v17, 0.0 }
 0x66e   : > { %v2101_v22 = vpack.c.bf16 %v2075_v53, %v2073_v18 }
 0x66f   : > { %v2102_v24 = vpack.c.bf16 %v2076_v21, %v2074_v19  ;;  %v2016_v26 = vpop.f32.mrb[92].mxu1 }
 0x670   : > { %v2017_v27 = vadd.f32 %v2016_v26, %v1857_v23  ;;  %v2018_v28 = vpop.f32.mrb[93].mxu1 }
 0x671   : > { %v2019_v52 = vadd.f32 %v2018_v28, %v1857_v23  ;;  %v2020_v30 = vpop.f32.mrb[94].mxu1  ;;  %2264 = vmatprep.subr.bf16.mxu0 %v2102_v24  ;;  %v1897_v24 = vpop.permute.xlu0 %1896 }
 0x672   : > { %v2021_v31 = vadd.f32 %v2020_v30, %v1862_v29  ;;  %v2022_v32 = vpop.f32.mrb[95].mxu1  ;;  %2265 = vmatpush1.bf16.msra.mxu0 %v2101_v22  ;;  %v2077_v34 = vmax.f32 %v2017_v27, 0.0 }
 0x673   : > { %v2023_v33 = vadd.f32 %v2022_v32, %v1862_v29  ;;  %v2078_v36 = vmax.f32 %v2019_v52, 0.0  ;;  %v1902_v52 = vpop.permute.xlu1 %1901 }
 0x674   : > { %v2079_v35 = vmax.f32 %v2021_v31, 0.0 }
 0x675   : > { %v2080_v37 = vmax.f32 %v2023_v33, 0.0 }
 0x676   : > { %v2103_v38 = vpack.c.bf16 %v2079_v35, %v2077_v34 }
 0x677   : > { %v2104_v40 = vpack.c.bf16 %v2080_v37, %v2078_v36  ;;  %v2026_v41 = vpop.f32.mrb[96].mxu1 }
 0x678   : > { %v2027_v42 = vadd.f32 %v2026_v41, %v1867_v39  ;;  %v2028_v43 = vpop.f32.mrb[97].mxu1  ;;  %v2742_v41 = vld [vmem:[%s3349_s1 + $0x180] sm:$0xff]  }
 0x679   : > { %v2029_v45 = vadd.f32 %v2028_v43, %v1867_v39  ;;  %v2030_v46 = vpop.f32.mrb[98].mxu1  ;;  %2266 = vmatprep.subr.bf16.mxu0 %v2104_v40  ;;  %v2744_v43 = vld [vmem:[%s3349_s1 + $0x190] sm:$0xff]  }
 0x67a   : > { %v2031_v47 = vadd.f32 %v2030_v46, %v1872_v44  ;;  %v2032_v55 = vpop.f32.mrb[99].mxu1  ;;  %2267 = vmatpush1.bf16.msra.mxu0 %v2103_v38  ;;  %v2081_v49 = vmax.f32 %v2027_v42, 0.0  ;;  %v2743_v42 = vld [vmem:[%s3349_s1 + $0x188] sm:$0xff]  }
 0x67b   : > { %v2033_v48 = vadd.f32 %v2032_v55, %v1872_v44  ;;  %v2082_v57 = vmax.f32 %v2029_v45, 0.0  ;;  %v2745_v44 = vld [vmem:[%s3349_s1 + $0x198] sm:$0xff]   ;;  %v2746_v45 = vld [vmem:[%s3349_s1 + $0x1a0] sm:$0xff]   ;;  %v2747_v46 = vld [vmem:[%s3349_s1 + $0x1a8] sm:$0xff]  }
 0x67c   : > { %v2083_v51 = vmax.f32 %v2031_v47, 0.0  ;;  %v2748_v47 = vld [vmem:[%s3349_s1 + $0x1b0] sm:$0xff]   ;;  %v2749_v55 = vld [vmem:[%s3349_s1 + $0x1b8] sm:$0xff]  }
 0x67d   : > { %v2084_v58 = vmax.f32 %v2033_v48, 0.0  ;;  %v2760_v48 = vmov 1966171168  }
 0x67e   : > { %v2105_v54 = vpack.c.bf16 %v2083_v51, %v2081_v49  ;;  %v2349_v49 = vunpack.c.l.s4 %v2760_v48  ;;  %v2351_v51 = vlaneseq }
 0x67f   : > { %v2106_v20 = vpack.c.bf16 %v2084_v58, %v2082_v57  ;;  %v2036_v56 = vpop.f32.mrb[100].mxu1  ;;  %v2150_v57 = vpop.permute.xlu0 %2149 }
 0x680   : > { %v2037_v59 = vadd.f32 %v2036_v56, %v1877_v25  ;;  %v2038_v60 = vpop.f32.mrb[101].mxu1  ;;  %vm2365_vm0 = vcmp.lt.s32.totalorder %v2351_v51, 256 }
 0x681   : > { %v2039_v50 = vadd.f32 %v2038_v60, %v1877_v25  ;;  %v2040_v62 = vpop.f32.mrb[102].mxu1  ;;  %2268 = vmatprep.subr.bf16.mxu0 %v2106_v20  ;;  %v2352_v25 = vshrl.u32 %v2351_v51, 7 }
 0x682   : > { %v2041_v63 = vadd.f32 %v2040_v62, %v1882_v61  ;;  %v2042_v0 = vpop.f32.mrb[103].mxu1  ;;  %2269 = vmatpush1.bf16.msra.mxu0 %v2105_v54  ;;  %v2085_v3 = vmax.f32 %v2037_v59, 0.0  ;;  %v2350_v54 = vunpack.c.0.s8 %v2349_v49 }
 0x683   : > { %v2043_v1 = vadd.f32 %v2042_v0, %v1882_v61  ;;  %v2086_v5 = vmax.f32 %v2039_v50, 0.0 }
 0x684   : > { %v2087_v4 = vmax.f32 %v2041_v63, 0.0  ;;  %v2353_v62 = vsub.s32 %v2350_v54, %v2352_v25 }
 0x685   : > { %v2088_v6 = vmax.f32 %v2043_v1, 0.0 }
 0x686   : > { %v2107_v7 = vpack.c.bf16 %v2087_v4, %v2085_v3 }
 0x687   : > { %v2108_v9 = vpack.c.bf16 %v2088_v6, %v2086_v5  ;;  %v2046_v10 = vpop.f32.mrb[104].mxu1 }
 0x688   : > { %v2047_v11 = vadd.f32 %v2046_v10, %v1887_v8  ;;  %v2048_v12 = vpop.f32.mrb[105].mxu1 }
 0x689   : > { %v2049_v14 = vadd.f32 %v2048_v12, %v1887_v8  ;;  %v2050_v15 = vpop.f32.mrb[106].mxu1  ;;  %2270 = vmatprep.subr.bf16.mxu0 %v2108_v9 }
 0x68a   : > { %v2051_v16 = vadd.f32 %v2050_v15, %v1892_v13  ;;  %v2052_v17 = vpop.f32.mrb[107].mxu1  ;;  %2271 = vmatpush1.bf16.msra.mxu0 %v2107_v7  ;;  %v2089_v53 = vmax.f32 %v2047_v11, 0.0 }
 0x68b   : > { %v2053_v18 = vadd.f32 %v2052_v17, %v1892_v13  ;;  %v2090_v21 = vmax.f32 %v2049_v14, 0.0 }
 0x68c   : > { %v2091_v19 = vmax.f32 %v2051_v16, 0.0 }
 0x68d   : > { %v2092_v22 = vmax.f32 %v2053_v18, 0.0 }
 0x68e   : > { %v2109_v23 = vpack.c.bf16 %v2091_v19, %v2089_v53 }
 0x68f   : > { %v2110_v26 = vpack.c.bf16 %v2092_v22, %v2090_v21  ;;  %v2056_v27 = vpop.f32.mrb[108].mxu1 }
 0x690   : > { %v2057_v28 = vadd.f32 %v2056_v27, %v1897_v24  ;;  %v2058_v29 = vpop.f32.mrb[109].mxu1 }
 0x691   : > { %v2059_v30 = vadd.f32 %v2058_v29, %v1897_v24  ;;  %v2060_v31 = vpop.f32.mrb[110].mxu1  ;;  %2272 = vmatprep.subr.bf16.mxu0 %v2110_v26 }
 0x692   : > { %v2061_v32 = vadd.f32 %v2060_v31, %v1902_v52  ;;  %v2062_v33 = vpop.f32.mrb[111].mxu1  ;;  %2273 = vmatpush1.bf16.msra.mxu0 %v2109_v23  ;;  %v2093_v35 = vmax.f32 %v2057_v28, 0.0 }
 0x693   : > { %v2063_v34 = vadd.f32 %v2062_v33, %v1902_v52  ;;  %v2094_v37 = vmax.f32 %v2059_v30, 0.0 }
 0x694   : > { %v2095_v36 = vmax.f32 %v2061_v32, 0.0 }
 0x695   : > { %v2096_v38 = vmax.f32 %v2063_v34, 0.0 }
 0x696   : > { %v2111_v39 = vpack.c.bf16 %v2095_v36, %v2093_v35 }
 0x697   : > { %v2112_v40 = vpack.c.bf16 %v2096_v38, %v2094_v37 }
 0x699   : > { %2274 = vmatprep.subr.bf16.mxu0 %v2112_v40 }
 0x69a   : > { %2275 = vmatpush1.bf16.msra.mxu0 %v2111_v39 }
 0x69d   : > { %2293 = vmatmul.mubr.bf16.vlgmr.msra.gmra.mrb[80].mxu0 %v2742_v41 }
 0x69e   : > { %2300 = vmatprep.mubr.bf16.mxu0 %v2758_v2 }
 0x6a5   : > { %2301 = vmatmul.mubr.bf16.gmra.mrb[84].mxu0 %v2743_v42 }
 0x6a6   : > { %2306 = vmatprep.mubr.bf16.mxu0 %v2758_v2 }
 0x6ad   : > { %2307 = vmatmul.mubr.bf16.gmra.mrb[88].mxu0 %v2744_v43 }
 0x6ae   : > { %2312 = vmatprep.mubr.bf16.mxu0 %v2758_v2 }
 0x6b5   : > { %2313 = vmatmul.mubr.bf16.gmra.mrb[92].mxu0 %v2745_v44 }
 0x6b6   : > { %2318 = vmatprep.mubr.bf16.mxu0 %v2758_v2 }
 0x6bd   : > { %2319 = vmatmul.mubr.bf16.gmra.mrb[96].mxu0 %v2746_v45 }
 0x6be   : > { %2324 = vmatprep.mubr.bf16.mxu0 %v2758_v2 }
 0x6c5   : > { %2325 = vmatmul.mubr.bf16.gmra.mrb[100].mxu0 %v2747_v46 }
 0x6c6   : > { %2330 = vmatprep.mubr.bf16.mxu0 %v2758_v2 }
 0x6cd   : > { %2331 = vmatmul.mubr.bf16.gmra.mrb[104].mxu0 %v2748_v47 }
 0x6ce   : > { %2336 = vmatprep.mubr.bf16.mxu0 %v2758_v2 }
 0x6d5   : > { %2337 = vmatmul.mubr.bf16.gmra.mrb[108].mxu0 %v2749_v55 }
 0x770   : > { %v2294_v58 = vpop.f32.mrb[80].mxu0 }
 0x771   : > { %v2295_v20 = vadd.f32 %v2294_v58, %v2150_v57  ;;  %v2296_v56 = vpop.f32.mrb[81].mxu0 }
 0x772   : > { %v2297_v59 = vadd.f32 %v2296_v56, %v2150_v57  ;;  %v2298_v60 = vpop.f32.mrb[82].mxu0 }
 0x773   : > { %v2343_v61 = vmax.f32 %v2295_v20, 0.0  ;;  %v2299_v2 = vpop.f32.mrb[83].mxu0 }
 0x774   : > { %v2344_v50 = vmax.f32 %v2297_v59, 0.0 }
 0x776   : > { %v2347_v63 = vcombine.low %v2343_v61, %v2344_v50 }
 0x778   : > { %v2354_v0 = vrot.slane %v2347_v63, %v2353_v62  ;;  %v2302_v1 = vpop.f32.mrb[84].mxu0 }
 0x779   : > { %v2303_v3 = vpop.f32.mrb[85].mxu0 }
 0x77a   : > { %v2361_v4 = vrot.slane %v2354_v0, %v2353_v62  ;;  %v2304_v5 = vpop.f32.mrb[86].mxu0 }
 0x77b   : > { %v2305_v6 = vpop.f32.mrb[87].mxu0 }
 0x77c   : > { %2367 = vst.msk [vmem:[%s170_s28] sm:$0x3] %vm2365_vm0, %v2361_v4 }
 0x780   : > { %v2308_v7 = vpop.f32.mrb[88].mxu0 }
 0x781   : > { %v2309_v8 = vpop.f32.mrb[89].mxu0 }
 0x782   : > { %v2310_v9 = vpop.f32.mrb[90].mxu0 }
 0x783   : > { %v2311_v10 = vpop.f32.mrb[91].mxu0 }
 0x788   : > { %v2314_v11 = vpop.f32.mrb[92].mxu0 }
 0x789   : > { %v2315_v12 = vpop.f32.mrb[93].mxu0 }
 0x78a   : > { %v2316_v13 = vpop.f32.mrb[94].mxu0 }
 0x78b   : > { %v2317_v14 = vpop.f32.mrb[95].mxu0 }
 0x790   : > { %v2320_v15 = vpop.f32.mrb[96].mxu0 }
 0x791   : > { %v2321_v16 = vpop.f32.mrb[97].mxu0 }
 0x792   : > { %v2322_v17 = vpop.f32.mrb[98].mxu0 }
 0x793   : > { %v2323_v18 = vpop.f32.mrb[99].mxu0 }
 0x798   : > { %v2326_v53 = vpop.f32.mrb[100].mxu0 }
 0x799   : > { %v2327_v19 = vpop.f32.mrb[101].mxu0 }
 0x79a   : > { %v2328_v21 = vpop.f32.mrb[102].mxu0 }
 0x79b   : > { %v2329_v22 = vpop.f32.mrb[103].mxu0 }
 0x7a0   : > { %v2332_v23 = vpop.f32.mrb[104].mxu0 }
 0x7a1   : > { %v2333_v24 = vpop.f32.mrb[105].mxu0 }
 0x7a2   : > { %v2334_v26 = vpop.f32.mrb[106].mxu0 }
 0x7a3   : > { %v2335_v27 = vpop.f32.mrb[107].mxu0 }
 0x7a8   : > { %v2338_v28 = vpop.f32.mrb[108].mxu0 }
 0x7a9   : > { %v2339_v29 = vpop.f32.mrb[109].mxu0 }
 0x7aa   : > { %v2340_v52 = vpop.f32.mrb[110].mxu0 }
 0x7ab   : > { %v2341_v30 = vpop.f32.mrb[111].mxu0 }
 0x7ac PF: > { %s13_s12 = sadd.s32 1, %s2756_s12  }
 0x7ad   : > { %p10_p5 = scmp.ge.s32.totalorder %s13_s12, 4  }
 0x7af   :  { %12 = sbr.rel (!%p10_p5) target bundleno = 1 (0x1), region = 74 }

</bundles_post_ra>
